<compile_context>
chip_gen: v7x
topology: tpu7x:2x2x1
jax: 0.10.0
libtpu: 0.0.40
codegen_flags: <defaults>
</compile_context>

<pallas_src>
import functools
import math

import jax
import jax.numpy as jnp
from jax.experimental import pallas as pl
from jax.experimental.pallas import tpu as pltpu


_K = 9        # conv kernel size of conv1/2/3
_P = 4        # 'same' padding for k=9
_EPS = 1e-5
_SLOPE = 0.1


# ----------------------------- in-kernel helpers -----------------------------

def _bn_train(acc, gamma, beta):
    """BatchNorm1d (train mode) on a (rows, Cout) f32 accumulator.

    Single-pass statistics: mean = E[x], var = E[x^2] - mean^2 (biased).
    """
    inv_n = 1.0 / acc.shape[0]
    mean = jnp.sum(acc, axis=0, keepdims=True) * inv_n
    ex2 = jnp.sum(acc * acc, axis=0, keepdims=True) * inv_n
    var = jnp.maximum(ex2 - mean * mean, 0.0)
    return (acc - mean) * jax.lax.rsqrt(var + _EPS) * gamma + beta


def _leaky(y):
    return jnp.where(y >= 0, y, _SLOPE * y)


def _conv9_matmul(pad_ref, cols_ref, w_bf, n_rows):
    """k=9 'same' conv as ONE deep MXU matmul via an im2col VMEM scratch.

    pad_ref  : (N, L + 2P, C) bf16 scratch, interior filled, halos zero.
    cols_ref : (N, L, 9*C)    bf16 scratch (im2col columns).
    w_bf     : (9*C, Cout)    bf16 weights.
    returns  : (N*L, Cout)    f32 pre-BN accumulator.
    """
    N, Lp, C = pad_ref.shape
    L = Lp - 2 * _P
    for k in range(_K):
        cols_ref[:, :, k * C:(k + 1) * C] = pad_ref[:, k:k + L, :]
    cols = cols_ref[...].reshape(n_rows, _K * C)
    return jnp.dot(cols, w_bf, preferred_element_type=jnp.float32)


# --------------------------------- kernel ------------------------------------

def block_kernel(x_ref, w1_ref, g1_ref, b1_ref, w2_ref, g2_ref, b2_ref,
                 w3_ref, g3_ref, b3_ref, wsc_ref, gsc_ref, bsc_ref,
                 o_ref, xpad, hpad, xcols, hcols, *, N, L, Cin, Cout):
    n_rows = N * L

    # ---- stage 0: zero-padded bf16 copy of the input, resident in VMEM ----
    xpad[...] = jnp.zeros_like(xpad)
    x_bf = x_ref[...].astype(jnp.bfloat16)
    xpad[:, _P:_P + L, :] = x_bf

    # ---- conv1 (k=9) + BN + leaky ----
    a1 = _conv9_matmul(xpad, xcols, w1_ref[...], n_rows)
    h1 = _leaky(_bn_train(a1, g1_ref[...], b1_ref[...]))

    # ---- conv2 (k=9) + BN + leaky (h1 stays in VMEM scratch) ----
    hpad[...] = jnp.zeros_like(hpad)
    hpad[:, _P:_P + L, :] = h1.reshape(N, L, Cout).astype(jnp.bfloat16)
    a2 = _conv9_matmul(hpad, hcols, w2_ref[...], n_rows)
    h2 = _leaky(_bn_train(a2, g2_ref[...], b2_ref[...]))

    # ---- conv3 (k=9) + BN, no activation (reuse hpad/hcols scratch) ----
    hpad[:, _P:_P + L, :] = h2.reshape(N, L, Cout).astype(jnp.bfloat16)
    a3 = _conv9_matmul(hpad, hcols, w3_ref[...], n_rows)
    y3 = _bn_train(a3, g3_ref[...], b3_ref[...])

    # ---- shortcut: conv (k=1) + BN ----
    asc = jnp.dot(x_bf.reshape(n_rows, Cin), wsc_ref[...],
                  preferred_element_type=jnp.float32)
    ysc = _bn_train(asc, gsc_ref[...], bsc_ref[...])

    # ---- residual add + leaky ----
    o_ref[...] = _leaky(y3 + ysc).reshape(N, L, Cout).astype(o_ref.dtype)


# --------------------------------- wrapper -----------------------------------

_VMEM_SPEC = pl.BlockSpec(memory_space=pltpu.MemorySpace.VMEM)


def _fused_vmem_estimate(N, L, Cin, Cout):
    """Rough VMEM working-set estimate (bytes) for the fused kernel."""
    Lp = L + 2 * _P
    bf, f32 = 2, 4
    io = N * L * Cin * f32 + N * L * Cout * f32
    weights = (_K * (Cin + 2 * Cout) * Cout + Cin * Cout) * bf
    scratch = N * Lp * (Cin + Cout) * bf + N * L * _K * (Cin + Cout) * bf
    live = 4 * N * L * Cout * f32          # f32 activations held live
    return io + weights + scratch + live


def basic_block_rn12(x_ncl, params):
    """Forward pass of BasicBlockRN12.  x_ncl: (N, C_in, L) as in PyTorch."""
    N, Cin, L = x_ncl.shape
    Cout = params["w1"].shape[2]

    est = _fused_vmem_estimate(N, L, Cin, Cout)
    if est > 40 * 1024 * 1024:
        # TODO(synk): grid-tiled two-pass-BN path for shapes too big to fuse.
        raise NotImplementedError(
            "fused BasicBlockRN12 working set exceeds the v7x VMEM budget")

    x_nlc = jnp.transpose(x_ncl, (0, 2, 1))                     # (N, L, Cin)

    # Weights to im2col-matmul layout, bf16 (accumulation stays f32 in-kernel).
    w1 = params["w1"].reshape(_K * Cin, Cout).astype(jnp.bfloat16)
    w2 = params["w2"].reshape(_K * Cout, Cout).astype(jnp.bfloat16)
    w3 = params["w3"].reshape(_K * Cout, Cout).astype(jnp.bfloat16)
    wsc = params["wsc"].reshape(Cin, Cout).astype(jnp.bfloat16)

    kernel = functools.partial(block_kernel, N=N, L=L, Cin=Cin, Cout=Cout)
    out = pl.pallas_call(
        kernel,
        out_shape=jax.ShapeDtypeStruct((N, L, Cout), jnp.float32),
        in_specs=[_VMEM_SPEC] * 13,
        out_specs=_VMEM_SPEC,
        scratch_shapes=[
            pltpu.VMEM((N, L + 2 * _P, Cin), jnp.bfloat16),    # padded x
            pltpu.VMEM((N, L + 2 * _P, Cout), jnp.bfloat16),   # padded h1/h2
            pltpu.VMEM((N, L, _K * Cin), jnp.bfloat16),        # im2col of x
            pltpu.VMEM((N, L, _K * Cout), jnp.bfloat16),       # im2col of h1/h2
        ],
        compiler_params=pltpu.CompilerParams(
            vmem_limit_bytes=int(min(60 * 2**20, max(32 * 2**20, 4 * est)))),
    )(x_nlc, w1, params["g1"], params["b1"],
      w2, params["g2"], params["b2"],
      w3, params["g3"], params["b3"],
      wsc, params["gsc"], params["bsc"])

    return jnp.transpose(out, (0, 2, 1))                        # (N, Cout, L)


# --------------------------- deterministic parameters -------------------------

def _kaiming_leaky_weight(key, out_f, in_f, K):
    # kaiming_normal_(mode='fan_out', nonlinearity='leaky_relu') as in ConvBN1d
    gain = math.sqrt(2.0 / (1.0 + 0.1 ** 2))
    std = gain / math.sqrt(out_f * K)
    w_oik = std * jax.random.normal(key, (out_f, in_f, K), jnp.float32)
    return jnp.transpose(w_oik, (2, 1, 0))        # (K, Cin, Cout) kernel layout


def _default_conv_weight(key, out_f, in_f, K):
    # PyTorch default Conv1d init (kaiming_uniform, a=sqrt(5)) ~ U(-1/sqrt(fan_in), .)
    bound = 1.0 / math.sqrt(in_f * K)
    w_oik = jax.random.uniform(key, (out_f, in_f, K), jnp.float32,
                               minval=-bound, maxval=bound)
    return jnp.transpose(w_oik, (2, 1, 0))


def make_params(key, in_f, out_f):
    k1, k2, k3, k4 = jax.random.split(key, 4)
    ones = jnp.ones((1, out_f), jnp.float32)
    zeros = jnp.zeros((1, out_f), jnp.float32)
    return {
        "w1": _kaiming_leaky_weight(k1, out_f, in_f, 9), "g1": ones, "b1": zeros,
        "w2": _kaiming_leaky_weight(k2, out_f, out_f, 9), "g2": ones, "b2": zeros,
        "w3": _default_conv_weight(k3, out_f, out_f, 9), "g3": ones, "b3": zeros,
        "wsc": _default_conv_weight(k4, out_f, in_f, 1), "gsc": ones, "bsc": zeros,
    }


# ----------------------------------- main -------------------------------------

if __name__ == "__main__":
    key = jax.random.PRNGKey(0)
    k_x, k_p = jax.random.split(key)

    N, in_f, out_f, L = 2, 4, 8, 16
    x = jax.random.normal(k_x, (N, in_f, L), jnp.float32)   # PyTorch NCL input
    params = make_params(k_p, in_f, out_f)

    out = basic_block_rn12(x, params)
    out = jax.block_until_ready(out)
    assert out.shape == (N, out_f, L)
    assert bool(jnp.all(jnp.isfinite(out)))
    print("KERNEL_OK")
</pallas_src>

<mosaic_0001>
module attributes {stable_mosaic.version = 11 : i64} {
  func.func @block_kernel(%arg0: memref<2x16x4xf32, #tpu.memory_space<vmem>>, %arg1: memref<36x8xbf16, #tpu.memory_space<vmem>>, %arg2: memref<1x8xf32, #tpu.memory_space<vmem>>, %arg3: memref<1x8xf32, #tpu.memory_space<vmem>>, %arg4: memref<72x8xbf16, #tpu.memory_space<vmem>>, %arg5: memref<1x8xf32, #tpu.memory_space<vmem>>, %arg6: memref<1x8xf32, #tpu.memory_space<vmem>>, %arg7: memref<72x8xbf16, #tpu.memory_space<vmem>>, %arg8: memref<1x8xf32, #tpu.memory_space<vmem>>, %arg9: memref<1x8xf32, #tpu.memory_space<vmem>>, %arg10: memref<4x8xbf16, #tpu.memory_space<vmem>>, %arg11: memref<1x8xf32, #tpu.memory_space<vmem>>, %arg12: memref<1x8xf32, #tpu.memory_space<vmem>>, %arg13: memref<2x16x8xf32, #tpu.memory_space<vmem>>, %arg14: memref<2x24x4xbf16, #tpu.memory_space<vmem>>, %arg15: memref<2x24x8xbf16, #tpu.memory_space<vmem>>, %arg16: memref<2x16x36xbf16, #tpu.memory_space<vmem>>, %arg17: memref<2x16x72xbf16, #tpu.memory_space<vmem>>) attributes {dimension_semantics = [], scalar_prefetch = 0 : i64, scratch_operands = 4 : i64, tpu.core_type = #tpu.core_type<tc>} {
    %cst = arith.constant 0.000000e+00 : bf16
    %0 = vector.broadcast %cst : bf16 to vector<2x24x4xbf16>
    %c0 = arith.constant 0 : index
    %c0_0 = arith.constant 0 : index
    %c0_1 = arith.constant 0 : index
    %1 = vector.load %arg14[%c0, %c0_0, %c0_1] : memref<2x24x4xbf16, #tpu.memory_space<vmem>>, vector<2x24x4xbf16>
    tpu.vector_store %arg14[%c0, %c0_0, %c0_1], %0 {strides = array<i32>} : memref<2x24x4xbf16, #tpu.memory_space<vmem>>, vector<2x24x4xbf16>,
    %c0_2 = arith.constant 0 : index
    %c0_3 = arith.constant 0 : index
    %c0_4 = arith.constant 0 : index
    %2 = vector.load %arg0[%c0_2, %c0_3, %c0_4] : memref<2x16x4xf32, #tpu.memory_space<vmem>>, vector<2x16x4xf32>
    %3 = arith.truncf %2 : vector<2x16x4xf32> to vector<2x16x4xbf16>
    %c0_5 = arith.constant 0 : index
    %c4 = arith.constant 4 : index
    %c0_6 = arith.constant 0 : index
    %4 = vector.load %arg14[%c0_5, %c4, %c0_6] : memref<2x24x4xbf16, #tpu.memory_space<vmem>>, vector<2x16x4xbf16>
    tpu.vector_store %arg14[%c0_5, %c4, %c0_6], %3 {strides = array<i32>} : memref<2x24x4xbf16, #tpu.memory_space<vmem>>, vector<2x16x4xbf16>,
    %c0_7 = arith.constant 0 : index
    %c0_8 = arith.constant 0 : index
    %5 = vector.load %arg1[%c0_7, %c0_8] : memref<36x8xbf16, #tpu.memory_space<vmem>>, vector<36x8xbf16>
    %c0_9 = arith.constant 0 : index
    %c0_10 = arith.constant 0 : index
    %c0_11 = arith.constant 0 : index
    %6 = vector.load %arg14[%c0_9, %c0_10, %c0_11] : memref<2x24x4xbf16, #tpu.memory_space<vmem>>, vector<2x16x4xbf16>
    %c0_12 = arith.constant 0 : index
    %c0_13 = arith.constant 0 : index
    %c0_14 = arith.constant 0 : index
    %7 = vector.load %arg16[%c0_12, %c0_13, %c0_14] : memref<2x16x36xbf16, #tpu.memory_space<vmem>>, vector<2x16x4xbf16>
    tpu.vector_store %arg16[%c0_12, %c0_13, %c0_14], %6 {strides = array<i32>} : memref<2x16x36xbf16, #tpu.memory_space<vmem>>, vector<2x16x4xbf16>,
    %c0_15 = arith.constant 0 : index
    %c1 = arith.constant 1 : index
    %c0_16 = arith.constant 0 : index
    %8 = vector.load %arg14[%c0_15, %c1, %c0_16] : memref<2x24x4xbf16, #tpu.memory_space<vmem>>, vector<2x16x4xbf16>
    %c0_17 = arith.constant 0 : index
    %c0_18 = arith.constant 0 : index
    %c4_19 = arith.constant 4 : index
    %9 = vector.load %arg16[%c0_17, %c0_18, %c4_19] : memref<2x16x36xbf16, #tpu.memory_space<vmem>>, vector<2x16x4xbf16>
    tpu.vector_store %arg16[%c0_17, %c0_18, %c4_19], %8 {strides = array<i32>} : memref<2x16x36xbf16, #tpu.memory_space<vmem>>, vector<2x16x4xbf16>,
    %c0_20 = arith.constant 0 : index
    %c2 = arith.constant 2 : index
    %c0_21 = arith.constant 0 : index
    %10 = vector.load %arg14[%c0_20, %c2, %c0_21] : memref<2x24x4xbf16, #tpu.memory_space<vmem>>, vector<2x16x4xbf16>
    %c0_22 = arith.constant 0 : index
    %c0_23 = arith.constant 0 : index
    %c8 = arith.constant 8 : index
    %11 = vector.load %arg16[%c0_22, %c0_23, %c8] : memref<2x16x36xbf16, #tpu.memory_space<vmem>>, vector<2x16x4xbf16>
    tpu.vector_store %arg16[%c0_22, %c0_23, %c8], %10 {strides = array<i32>} : memref<2x16x36xbf16, #tpu.memory_space<vmem>>, vector<2x16x4xbf16>,
    %c0_24 = arith.constant 0 : index
    %c3 = arith.constant 3 : index
    %c0_25 = arith.constant 0 : index
    %12 = vector.load %arg14[%c0_24, %c3, %c0_25] : memref<2x24x4xbf16, #tpu.memory_space<vmem>>, vector<2x16x4xbf16>
    %c0_26 = arith.constant 0 : index
    %c0_27 = arith.constant 0 : index
    %c12 = arith.constant 12 : index
    %13 = vector.load %arg16[%c0_26, %c0_27, %c12] : memref<2x16x36xbf16, #tpu.memory_space<vmem>>, vector<2x16x4xbf16>
    tpu.vector_store %arg16[%c0_26, %c0_27, %c12], %12 {strides = array<i32>} : memref<2x16x36xbf16, #tpu.memory_space<vmem>>, vector<2x16x4xbf16>,
    %c0_28 = arith.constant 0 : index
    %c4_29 = arith.constant 4 : index
    %c0_30 = arith.constant 0 : index
    %14 = vector.load %arg14[%c0_28, %c4_29, %c0_30] : memref<2x24x4xbf16, #tpu.memory_space<vmem>>, vector<2x16x4xbf16>
    %c0_31 = arith.constant 0 : index
    %c0_32 = arith.constant 0 : index
    %c16 = arith.constant 16 : index
    %15 = vector.load %arg16[%c0_31, %c0_32, %c16] : memref<2x16x36xbf16, #tpu.memory_space<vmem>>, vector<2x16x4xbf16>
    tpu.vector_store %arg16[%c0_31, %c0_32, %c16], %14 {strides = array<i32>} : memref<2x16x36xbf16, #tpu.memory_space<vmem>>, vector<2x16x4xbf16>,
    %c0_33 = arith.constant 0 : index
    %c5 = arith.constant 5 : index
    %c0_34 = arith.constant 0 : index
    %16 = vector.load %arg14[%c0_33, %c5, %c0_34] : memref<2x24x4xbf16, #tpu.memory_space<vmem>>, vector<2x16x4xbf16>
    %c0_35 = arith.constant 0 : index
    %c0_36 = arith.constant 0 : index
    %c20 = arith.constant 20 : index
    %17 = vector.load %arg16[%c0_35, %c0_36, %c20] : memref<2x16x36xbf16, #tpu.memory_space<vmem>>, vector<2x16x4xbf16>
    tpu.vector_store %arg16[%c0_35, %c0_36, %c20], %16 {strides = array<i32>} : memref<2x16x36xbf16, #tpu.memory_space<vmem>>, vector<2x16x4xbf16>,
    %c0_37 = arith.constant 0 : index
    %c6 = arith.constant 6 : index
    %c0_38 = arith.constant 0 : index
    %18 = vector.load %arg14[%c0_37, %c6, %c0_38] : memref<2x24x4xbf16, #tpu.memory_space<vmem>>, vector<2x16x4xbf16>
    %c0_39 = arith.constant 0 : index
    %c0_40 = arith.constant 0 : index
    %c24 = arith.constant 24 : index
    %19 = vector.load %arg16[%c0_39, %c0_40, %c24] : memref<2x16x36xbf16, #tpu.memory_space<vmem>>, vector<2x16x4xbf16>
    tpu.vector_store %arg16[%c0_39, %c0_40, %c24], %18 {strides = array<i32>} : memref<2x16x36xbf16, #tpu.memory_space<vmem>>, vector<2x16x4xbf16>,
    %c0_41 = arith.constant 0 : index
    %c7 = arith.constant 7 : index
    %c0_42 = arith.constant 0 : index
    %20 = vector.load %arg14[%c0_41, %c7, %c0_42] : memref<2x24x4xbf16, #tpu.memory_space<vmem>>, vector<2x16x4xbf16>
    %c0_43 = arith.constant 0 : index
    %c0_44 = arith.constant 0 : index
    %c28 = arith.constant 28 : index
    %21 = vector.load %arg16[%c0_43, %c0_44, %c28] : memref<2x16x36xbf16, #tpu.memory_space<vmem>>, vector<2x16x4xbf16>
    tpu.vector_store %arg16[%c0_43, %c0_44, %c28], %20 {strides = array<i32>} : memref<2x16x36xbf16, #tpu.memory_space<vmem>>, vector<2x16x4xbf16>,
    %c0_45 = arith.constant 0 : index
    %c8_46 = arith.constant 8 : index
    %c0_47 = arith.constant 0 : index
    %22 = vector.load %arg14[%c0_45, %c8_46, %c0_47] : memref<2x24x4xbf16, #tpu.memory_space<vmem>>, vector<2x16x4xbf16>
    %c0_48 = arith.constant 0 : index
    %c0_49 = arith.constant 0 : index
    %c32 = arith.constant 32 : index
    %23 = vector.load %arg16[%c0_48, %c0_49, %c32] : memref<2x16x36xbf16, #tpu.memory_space<vmem>>, vector<2x16x4xbf16>
    tpu.vector_store %arg16[%c0_48, %c0_49, %c32], %22 {strides = array<i32>} : memref<2x16x36xbf16, #tpu.memory_space<vmem>>, vector<2x16x4xbf16>,
    %c0_50 = arith.constant 0 : index
    %c0_51 = arith.constant 0 : index
    %c0_52 = arith.constant 0 : index
    %24 = vector.load %arg16[%c0_50, %c0_51, %c0_52] : memref<2x16x36xbf16, #tpu.memory_space<vmem>>, vector<2x16x36xbf16>
    %25 = vector.shape_cast %24 : vector<2x16x36xbf16> to vector<32x36xbf16>
    %cst_53 = arith.constant dense<0.000000e+00> : vector<32x8xf32>
    %26 = tpu.matmul %25, %5, %cst_53 {dimension_numbers = #tpu.dot_dimension_numbers<[1], [0], [0], [1], [0, 0, 1, 1], [], []>} : vector<32x36xbf16>, vector<36x8xbf16>, vector<32x8xf32> -> vector<32x8xf32>
    %c0_54 = arith.constant 0 : index
    %c0_55 = arith.constant 0 : index
    %27 = vector.load %arg2[%c0_54, %c0_55] : memref<1x8xf32, #tpu.memory_space<vmem>>, vector<1x8xf32>
    %c0_56 = arith.constant 0 : index
    %c0_57 = arith.constant 0 : index
    %28 = vector.load %arg3[%c0_56, %c0_57] : memref<1x8xf32, #tpu.memory_space<vmem>>, vector<1x8xf32>
    %cst_58 = arith.constant dense<0.000000e+00> : vector<8xf32>
    %29 = vector.multi_reduction <add>, %26, %cst_58 [0] : vector<32x8xf32> to vector<8xf32>
    %30 = vector.shape_cast %29 : vector<8xf32> to vector<1x8xf32>
    %cst_59 = arith.constant 3.125000e-02 : f32
    %31 = vector.broadcast %cst_59 : f32 to vector<1x8xf32>
    %32 = arith.mulf %30, %31 : vector<1x8xf32>
    %33 = arith.mulf %26, %26 : vector<32x8xf32>
    %cst_60 = arith.constant dense<0.000000e+00> : vector<8xf32>
    %34 = vector.multi_reduction <add>, %33, %cst_60 [0] : vector<32x8xf32> to vector<8xf32>
    %35 = vector.shape_cast %34 : vector<8xf32> to vector<1x8xf32>
    %cst_61 = arith.constant 3.125000e-02 : f32
    %36 = vector.broadcast %cst_61 : f32 to vector<1x8xf32>
    %37 = arith.mulf %35, %36 : vector<1x8xf32>
    %38 = arith.mulf %32, %32 : vector<1x8xf32>
    %39 = arith.subf %37, %38 : vector<1x8xf32>
    %cst_62 = arith.constant 0.000000e+00 : f32
    %40 = vector.broadcast %cst_62 : f32 to vector<1x8xf32>
    %41 = arith.maximumf %39, %40 : vector<1x8xf32>
    %42 = vector.broadcast %32 : vector<1x8xf32> to vector<32x8xf32>
    %43 = arith.subf %26, %42 : vector<32x8xf32>
    %cst_63 = arith.constant 9.99999974E-6 : f32
    %44 = vector.broadcast %cst_63 : f32 to vector<1x8xf32>
    %45 = arith.addf %41, %44 : vector<1x8xf32>
    %46 = math.rsqrt %45 : vector<1x8xf32>
    %47 = vector.broadcast %46 : vector<1x8xf32> to vector<32x8xf32>
    %48 = arith.mulf %43, %47 : vector<32x8xf32>
    %49 = vector.broadcast %27 : vector<1x8xf32> to vector<32x8xf32>
    %50 = arith.mulf %48, %49 : vector<32x8xf32>
    %51 = vector.broadcast %28 : vector<1x8xf32> to vector<32x8xf32>
    %52 = arith.addf %50, %51 : vector<32x8xf32>
    %cst_64 = arith.constant 0.000000e+00 : f32
    %53 = vector.broadcast %cst_64 : f32 to vector<32x8xf32>
    %54 = arith.cmpf oge, %52, %53 : vector<32x8xf32>
    %cst_65 = arith.constant 1.000000e-01 : f32
    %55 = vector.broadcast %cst_65 : f32 to vector<32x8xf32>
    %56 = arith.mulf %55, %52 : vector<32x8xf32>
    %57 = arith.select %54, %52, %56 : vector<32x8xi1>, vector<32x8xf32>
    %cst_66 = arith.constant 0.000000e+00 : bf16
    %58 = vector.broadcast %cst_66 : bf16 to vector<2x24x8xbf16>
    %c0_67 = arith.constant 0 : index
    %c0_68 = arith.constant 0 : index
    %c0_69 = arith.constant 0 : index
    %59 = vector.load %arg15[%c0_67, %c0_68, %c0_69] : memref<2x24x8xbf16, #tpu.memory_space<vmem>>, vector<2x24x8xbf16>
    tpu.vector_store %arg15[%c0_67, %c0_68, %c0_69], %58 {strides = array<i32>} : memref<2x24x8xbf16, #tpu.memory_space<vmem>>, vector<2x24x8xbf16>,
    %60 = vector.shape_cast %57 : vector<32x8xf32> to vector<2x16x8xf32>
    %61 = arith.truncf %60 : vector<2x16x8xf32> to vector<2x16x8xbf16>
    %c0_70 = arith.constant 0 : index
    %c4_71 = arith.constant 4 : index
    %c0_72 = arith.constant 0 : index
    %62 = vector.load %arg15[%c0_70, %c4_71, %c0_72] : memref<2x24x8xbf16, #tpu.memory_space<vmem>>, vector<2x16x8xbf16>
    tpu.vector_store %arg15[%c0_70, %c4_71, %c0_72], %61 {strides = array<i32>} : memref<2x24x8xbf16, #tpu.memory_space<vmem>>, vector<2x16x8xbf16>,
    %c0_73 = arith.constant 0 : index
    %c0_74 = arith.constant 0 : index
    %63 = vector.load %arg4[%c0_73, %c0_74] : memref<72x8xbf16, #tpu.memory_space<vmem>>, vector<72x8xbf16>
    %c0_75 = arith.constant 0 : index
    %c0_76 = arith.constant 0 : index
    %c0_77 = arith.constant 0 : index
    %64 = vector.load %arg15[%c0_75, %c0_76, %c0_77] : memref<2x24x8xbf16, #tpu.memory_space<vmem>>, vector<2x16x8xbf16>
    %c0_78 = arith.constant 0 : index
    %c0_79 = arith.constant 0 : index
    %c0_80 = arith.constant 0 : index
    %65 = vector.load %arg17[%c0_78, %c0_79, %c0_80] : memref<2x16x72xbf16, #tpu.memory_space<vmem>>, vector<2x16x8xbf16>
    tpu.vector_store %arg17[%c0_78, %c0_79, %c0_80], %64 {strides = array<i32>} : memref<2x16x72xbf16, #tpu.memory_space<vmem>>, vector<2x16x8xbf16>,
    %c0_81 = arith.constant 0 : index
    %c1_82 = arith.constant 1 : index
    %c0_83 = arith.constant 0 : index
    %66 = vector.load %arg15[%c0_81, %c1_82, %c0_83] : memref<2x24x8xbf16, #tpu.memory_space<vmem>>, vector<2x16x8xbf16>
    %c0_84 = arith.constant 0 : index
    %c0_85 = arith.constant 0 : index
    %c8_86 = arith.constant 8 : index
    %67 = vector.load %arg17[%c0_84, %c0_85, %c8_86] : memref<2x16x72xbf16, #tpu.memory_space<vmem>>, vector<2x16x8xbf16>
    tpu.vector_store %arg17[%c0_84, %c0_85, %c8_86], %66 {strides = array<i32>} : memref<2x16x72xbf16, #tpu.memory_space<vmem>>, vector<2x16x8xbf16>,
    %c0_87 = arith.constant 0 : index
    %c2_88 = arith.constant 2 : index
    %c0_89 = arith.constant 0 : index
    %68 = vector.load %arg15[%c0_87, %c2_88, %c0_89] : memref<2x24x8xbf16, #tpu.memory_space<vmem>>, vector<2x16x8xbf16>
    %c0_90 = arith.constant 0 : index
    %c0_91 = arith.constant 0 : index
    %c16_92 = arith.constant 16 : index
    %69 = vector.load %arg17[%c0_90, %c0_91, %c16_92] : memref<2x16x72xbf16, #tpu.memory_space<vmem>>, vector<2x16x8xbf16>
    tpu.vector_store %arg17[%c0_90, %c0_91, %c16_92], %68 {strides = array<i32>} : memref<2x16x72xbf16, #tpu.memory_space<vmem>>, vector<2x16x8xbf16>,
    %c0_93 = arith.constant 0 : index
    %c3_94 = arith.constant 3 : index
    %c0_95 = arith.constant 0 : index
    %70 = vector.load %arg15[%c0_93, %c3_94, %c0_95] : memref<2x24x8xbf16, #tpu.memory_space<vmem>>, vector<2x16x8xbf16>
    %c0_96 = arith.constant 0 : index
    %c0_97 = arith.constant 0 : index
    %c24_98 = arith.constant 24 : index
    %71 = vector.load %arg17[%c0_96, %c0_97, %c24_98] : memref<2x16x72xbf16, #tpu.memory_space<vmem>>, vector<2x16x8xbf16>
    tpu.vector_store %arg17[%c0_96, %c0_97, %c24_98], %70 {strides = array<i32>} : memref<2x16x72xbf16, #tpu.memory_space<vmem>>, vector<2x16x8xbf16>,
    %c0_99 = arith.constant 0 : index
    %c4_100 = arith.constant 4 : index
    %c0_101 = arith.constant 0 : index
    %72 = vector.load %arg15[%c0_99, %c4_100, %c0_101] : memref<2x24x8xbf16, #tpu.memory_space<vmem>>, vector<2x16x8xbf16>
    %c0_102 = arith.constant 0 : index
    %c0_103 = arith.constant 0 : index
    %c32_104 = arith.constant 32 : index
    %73 = vector.load %arg17[%c0_102, %c0_103, %c32_104] : memref<2x16x72xbf16, #tpu.memory_space<vmem>>, vector<2x16x8xbf16>
    tpu.vector_store %arg17[%c0_102, %c0_103, %c32_104], %72 {strides = array<i32>} : memref<2x16x72xbf16, #tpu.memory_space<vmem>>, vector<2x16x8xbf16>,
    %c0_105 = arith.constant 0 : index
    %c5_106 = arith.constant 5 : index
    %c0_107 = arith.constant 0 : index
    %74 = vector.load %arg15[%c0_105, %c5_106, %c0_107] : memref<2x24x8xbf16, #tpu.memory_space<vmem>>, vector<2x16x8xbf16>
    %c0_108 = arith.constant 0 : index
    %c0_109 = arith.constant 0 : index
    %c40 = arith.constant 40 : index
    %75 = vector.load %arg17[%c0_108, %c0_109, %c40] : memref<2x16x72xbf16, #tpu.memory_space<vmem>>, vector<2x16x8xbf16>
    tpu.vector_store %arg17[%c0_108, %c0_109, %c40], %74 {strides = array<i32>} : memref<2x16x72xbf16, #tpu.memory_space<vmem>>, vector<2x16x8xbf16>,
    %c0_110 = arith.constant 0 : index
    %c6_111 = arith.constant 6 : index
    %c0_112 = arith.constant 0 : index
    %76 = vector.load %arg15[%c0_110, %c6_111, %c0_112] : memref<2x24x8xbf16, #tpu.memory_space<vmem>>, vector<2x16x8xbf16>
    %c0_113 = arith.constant 0 : index
    %c0_114 = arith.constant 0 : index
    %c48 = arith.constant 48 : index
    %77 = vector.load %arg17[%c0_113, %c0_114, %c48] : memref<2x16x72xbf16, #tpu.memory_space<vmem>>, vector<2x16x8xbf16>
    tpu.vector_store %arg17[%c0_113, %c0_114, %c48], %76 {strides = array<i32>} : memref<2x16x72xbf16, #tpu.memory_space<vmem>>, vector<2x16x8xbf16>,
    %c0_115 = arith.constant 0 : index
    %c7_116 = arith.constant 7 : index
    %c0_117 = arith.constant 0 : index
    %78 = vector.load %arg15[%c0_115, %c7_116, %c0_117] : memref<2x24x8xbf16, #tpu.memory_space<vmem>>, vector<2x16x8xbf16>
    %c0_118 = arith.constant 0 : index
    %c0_119 = arith.constant 0 : index
    %c56 = arith.constant 56 : index
    %79 = vector.load %arg17[%c0_118, %c0_119, %c56] : memref<2x16x72xbf16, #tpu.memory_space<vmem>>, vector<2x16x8xbf16>
    tpu.vector_store %arg17[%c0_118, %c0_119, %c56], %78 {strides = array<i32>} : memref<2x16x72xbf16, #tpu.memory_space<vmem>>, vector<2x16x8xbf16>,
    %c0_120 = arith.constant 0 : index
    %c8_121 = arith.constant 8 : index
    %c0_122 = arith.constant 0 : index
    %80 = vector.load %arg15[%c0_120, %c8_121, %c0_122] : memref<2x24x8xbf16, #tpu.memory_space<vmem>>, vector<2x16x8xbf16>
    %c0_123 = arith.constant 0 : index
    %c0_124 = arith.constant 0 : index
    %c64 = arith.constant 64 : index
    %81 = vector.load %arg17[%c0_123, %c0_124, %c64] : memref<2x16x72xbf16, #tpu.memory_space<vmem>>, vector<2x16x8xbf16>
    tpu.vector_store %arg17[%c0_123, %c0_124, %c64], %80 {strides = array<i32>} : memref<2x16x72xbf16, #tpu.memory_space<vmem>>, vector<2x16x8xbf16>,
    %c0_125 = arith.constant 0 : index
    %c0_126 = arith.constant 0 : index
    %c0_127 = arith.constant 0 : index
    %82 = vector.load %arg17[%c0_125, %c0_126, %c0_127] : memref<2x16x72xbf16, #tpu.memory_space<vmem>>, vector<2x16x72xbf16>
    %83 = vector.shape_cast %82 : vector<2x16x72xbf16> to vector<32x72xbf16>
    %cst_128 = arith.constant dense<0.000000e+00> : vector<32x8xf32>
    %84 = tpu.matmul %83, %63, %cst_128 {dimension_numbers = #tpu.dot_dimension_numbers<[1], [0], [0], [1], [0, 0, 1, 1], [], []>} : vector<32x72xbf16>, vector<72x8xbf16>, vector<32x8xf32> -> vector<32x8xf32>
    %c0_129 = arith.constant 0 : index
    %c0_130 = arith.constant 0 : index
    %85 = vector.load %arg5[%c0_129, %c0_130] : memref<1x8xf32, #tpu.memory_space<vmem>>, vector<1x8xf32>
    %c0_131 = arith.constant 0 : index
    %c0_132 = arith.constant 0 : index
    %86 = vector.load %arg6[%c0_131, %c0_132] : memref<1x8xf32, #tpu.memory_space<vmem>>, vector<1x8xf32>
    %cst_133 = arith.constant dense<0.000000e+00> : vector<8xf32>
    %87 = vector.multi_reduction <add>, %84, %cst_133 [0] : vector<32x8xf32> to vector<8xf32>
    %88 = vector.shape_cast %87 : vector<8xf32> to vector<1x8xf32>
    %cst_134 = arith.constant 3.125000e-02 : f32
    %89 = vector.broadcast %cst_134 : f32 to vector<1x8xf32>
    %90 = arith.mulf %88, %89 : vector<1x8xf32>
    %91 = arith.mulf %84, %84 : vector<32x8xf32>
    %cst_135 = arith.constant dense<0.000000e+00> : vector<8xf32>
    %92 = vector.multi_reduction <add>, %91, %cst_135 [0] : vector<32x8xf32> to vector<8xf32>
    %93 = vector.shape_cast %92 : vector<8xf32> to vector<1x8xf32>
    %cst_136 = arith.constant 3.125000e-02 : f32
    %94 = vector.broadcast %cst_136 : f32 to vector<1x8xf32>
    %95 = arith.mulf %93, %94 : vector<1x8xf32>
    %96 = arith.mulf %90, %90 : vector<1x8xf32>
    %97 = arith.subf %95, %96 : vector<1x8xf32>
    %cst_137 = arith.constant 0.000000e+00 : f32
    %98 = vector.broadcast %cst_137 : f32 to vector<1x8xf32>
    %99 = arith.maximumf %97, %98 : vector<1x8xf32>
    %100 = vector.broadcast %90 : vector<1x8xf32> to vector<32x8xf32>
    %101 = arith.subf %84, %100 : vector<32x8xf32>
    %cst_138 = arith.constant 9.99999974E-6 : f32
    %102 = vector.broadcast %cst_138 : f32 to vector<1x8xf32>
    %103 = arith.addf %99, %102 : vector<1x8xf32>
    %104 = math.rsqrt %103 : vector<1x8xf32>
    %105 = vector.broadcast %104 : vector<1x8xf32> to vector<32x8xf32>
    %106 = arith.mulf %101, %105 : vector<32x8xf32>
    %107 = vector.broadcast %85 : vector<1x8xf32> to vector<32x8xf32>
    %108 = arith.mulf %106, %107 : vector<32x8xf32>
    %109 = vector.broadcast %86 : vector<1x8xf32> to vector<32x8xf32>
    %110 = arith.addf %108, %109 : vector<32x8xf32>
    %cst_139 = arith.constant 0.000000e+00 : f32
    %111 = vector.broadcast %cst_139 : f32 to vector<32x8xf32>
    %112 = arith.cmpf oge, %110, %111 : vector<32x8xf32>
    %cst_140 = arith.constant 1.000000e-01 : f32
    %113 = vector.broadcast %cst_140 : f32 to vector<32x8xf32>
    %114 = arith.mulf %113, %110 : vector<32x8xf32>
    %115 = arith.select %112, %110, %114 : vector<32x8xi1>, vector<32x8xf32>
    %116 = vector.shape_cast %115 : vector<32x8xf32> to vector<2x16x8xf32>
    %117 = arith.truncf %116 : vector<2x16x8xf32> to vector<2x16x8xbf16>
    %c0_141 = arith.constant 0 : index
    %c4_142 = arith.constant 4 : index
    %c0_143 = arith.constant 0 : index
    %118 = vector.load %arg15[%c0_141, %c4_142, %c0_143] : memref<2x24x8xbf16, #tpu.memory_space<vmem>>, vector<2x16x8xbf16>
    tpu.vector_store %arg15[%c0_141, %c4_142, %c0_143], %117 {strides = array<i32>} : memref<2x24x8xbf16, #tpu.memory_space<vmem>>, vector<2x16x8xbf16>,
    %c0_144 = arith.constant 0 : index
    %c0_145 = arith.constant 0 : index
    %119 = vector.load %arg7[%c0_144, %c0_145] : memref<72x8xbf16, #tpu.memory_space<vmem>>, vector<72x8xbf16>
    %c0_146 = arith.constant 0 : index
    %c0_147 = arith.constant 0 : index
    %c0_148 = arith.constant 0 : index
    %120 = vector.load %arg15[%c0_146, %c0_147, %c0_148] : memref<2x24x8xbf16, #tpu.memory_space<vmem>>, vector<2x16x8xbf16>
    %c0_149 = arith.constant 0 : index
    %c0_150 = arith.constant 0 : index
    %c0_151 = arith.constant 0 : index
    %121 = vector.load %arg17[%c0_149, %c0_150, %c0_151] : memref<2x16x72xbf16, #tpu.memory_space<vmem>>, vector<2x16x8xbf16>
    tpu.vector_store %arg17[%c0_149, %c0_150, %c0_151], %120 {strides = array<i32>} : memref<2x16x72xbf16, #tpu.memory_space<vmem>>, vector<2x16x8xbf16>,
    %c0_152 = arith.constant 0 : index
    %c1_153 = arith.constant 1 : index
    %c0_154 = arith.constant 0 : index
    %122 = vector.load %arg15[%c0_152, %c1_153, %c0_154] : memref<2x24x8xbf16, #tpu.memory_space<vmem>>, vector<2x16x8xbf16>
    %c0_155 = arith.constant 0 : index
    %c0_156 = arith.constant 0 : index
    %c8_157 = arith.constant 8 : index
    %123 = vector.load %arg17[%c0_155, %c0_156, %c8_157] : memref<2x16x72xbf16, #tpu.memory_space<vmem>>, vector<2x16x8xbf16>
    tpu.vector_store %arg17[%c0_155, %c0_156, %c8_157], %122 {strides = array<i32>} : memref<2x16x72xbf16, #tpu.memory_space<vmem>>, vector<2x16x8xbf16>,
    %c0_158 = arith.constant 0 : index
    %c2_159 = arith.constant 2 : index
    %c0_160 = arith.constant 0 : index
    %124 = vector.load %arg15[%c0_158, %c2_159, %c0_160] : memref<2x24x8xbf16, #tpu.memory_space<vmem>>, vector<2x16x8xbf16>
    %c0_161 = arith.constant 0 : index
    %c0_162 = arith.constant 0 : index
    %c16_163 = arith.constant 16 : index
    %125 = vector.load %arg17[%c0_161, %c0_162, %c16_163] : memref<2x16x72xbf16, #tpu.memory_space<vmem>>, vector<2x16x8xbf16>
    tpu.vector_store %arg17[%c0_161, %c0_162, %c16_163], %124 {strides = array<i32>} : memref<2x16x72xbf16, #tpu.memory_space<vmem>>, vector<2x16x8xbf16>,
    %c0_164 = arith.constant 0 : index
    %c3_165 = arith.constant 3 : index
    %c0_166 = arith.constant 0 : index
    %126 = vector.load %arg15[%c0_164, %c3_165, %c0_166] : memref<2x24x8xbf16, #tpu.memory_space<vmem>>, vector<2x16x8xbf16>
    %c0_167 = arith.constant 0 : index
    %c0_168 = arith.constant 0 : index
    %c24_169 = arith.constant 24 : index
    %127 = vector.load %arg17[%c0_167, %c0_168, %c24_169] : memref<2x16x72xbf16, #tpu.memory_space<vmem>>, vector<2x16x8xbf16>
    tpu.vector_store %arg17[%c0_167, %c0_168, %c24_169], %126 {strides = array<i32>} : memref<2x16x72xbf16, #tpu.memory_space<vmem>>, vector<2x16x8xbf16>,
    %c0_170 = arith.constant 0 : index
    %c4_171 = arith.constant 4 : index
    %c0_172 = arith.constant 0 : index
    %128 = vector.load %arg15[%c0_170, %c4_171, %c0_172] : memref<2x24x8xbf16, #tpu.memory_space<vmem>>, vector<2x16x8xbf16>
    %c0_173 = arith.constant 0 : index
    %c0_174 = arith.constant 0 : index
    %c32_175 = arith.constant 32 : index
    %129 = vector.load %arg17[%c0_173, %c0_174, %c32_175] : memref<2x16x72xbf16, #tpu.memory_space<vmem>>, vector<2x16x8xbf16>
    tpu.vector_store %arg17[%c0_173, %c0_174, %c32_175], %128 {strides = array<i32>} : memref<2x16x72xbf16, #tpu.memory_space<vmem>>, vector<2x16x8xbf16>,
    %c0_176 = arith.constant 0 : index
    %c5_177 = arith.constant 5 : index
    %c0_178 = arith.constant 0 : index
    %130 = vector.load %arg15[%c0_176, %c5_177, %c0_178] : memref<2x24x8xbf16, #tpu.memory_space<vmem>>, vector<2x16x8xbf16>
    %c0_179 = arith.constant 0 : index
    %c0_180 = arith.constant 0 : index
    %c40_181 = arith.constant 40 : index
    %131 = vector.load %arg17[%c0_179, %c0_180, %c40_181] : memref<2x16x72xbf16, #tpu.memory_space<vmem>>, vector<2x16x8xbf16>
    tpu.vector_store %arg17[%c0_179, %c0_180, %c40_181], %130 {strides = array<i32>} : memref<2x16x72xbf16, #tpu.memory_space<vmem>>, vector<2x16x8xbf16>,
    %c0_182 = arith.constant 0 : index
    %c6_183 = arith.constant 6 : index
    %c0_184 = arith.constant 0 : index
    %132 = vector.load %arg15[%c0_182, %c6_183, %c0_184] : memref<2x24x8xbf16, #tpu.memory_space<vmem>>, vector<2x16x8xbf16>
    %c0_185 = arith.constant 0 : index
    %c0_186 = arith.constant 0 : index
    %c48_187 = arith.constant 48 : index
    %133 = vector.load %arg17[%c0_185, %c0_186, %c48_187] : memref<2x16x72xbf16, #tpu.memory_space<vmem>>, vector<2x16x8xbf16>
    tpu.vector_store %arg17[%c0_185, %c0_186, %c48_187], %132 {strides = array<i32>} : memref<2x16x72xbf16, #tpu.memory_space<vmem>>, vector<2x16x8xbf16>,
    %c0_188 = arith.constant 0 : index
    %c7_189 = arith.constant 7 : index
    %c0_190 = arith.constant 0 : index
    %134 = vector.load %arg15[%c0_188, %c7_189, %c0_190] : memref<2x24x8xbf16, #tpu.memory_space<vmem>>, vector<2x16x8xbf16>
    %c0_191 = arith.constant 0 : index
    %c0_192 = arith.constant 0 : index
    %c56_193 = arith.constant 56 : index
    %135 = vector.load %arg17[%c0_191, %c0_192, %c56_193] : memref<2x16x72xbf16, #tpu.memory_space<vmem>>, vector<2x16x8xbf16>
    tpu.vector_store %arg17[%c0_191, %c0_192, %c56_193], %134 {strides = array<i32>} : memref<2x16x72xbf16, #tpu.memory_space<vmem>>, vector<2x16x8xbf16>,
    %c0_194 = arith.constant 0 : index
    %c8_195 = arith.constant 8 : index
    %c0_196 = arith.constant 0 : index
    %136 = vector.load %arg15[%c0_194, %c8_195, %c0_196] : memref<2x24x8xbf16, #tpu.memory_space<vmem>>, vector<2x16x8xbf16>
    %c0_197 = arith.constant 0 : index
    %c0_198 = arith.constant 0 : index
    %c64_199 = arith.constant 64 : index
    %137 = vector.load %arg17[%c0_197, %c0_198, %c64_199] : memref<2x16x72xbf16, #tpu.memory_space<vmem>>, vector<2x16x8xbf16>
    tpu.vector_store %arg17[%c0_197, %c0_198, %c64_199], %136 {strides = array<i32>} : memref<2x16x72xbf16, #tpu.memory_space<vmem>>, vector<2x16x8xbf16>,
    %c0_200 = arith.constant 0 : index
    %c0_201 = arith.constant 0 : index
    %c0_202 = arith.constant 0 : index
    %138 = vector.load %arg17[%c0_200, %c0_201, %c0_202] : memref<2x16x72xbf16, #tpu.memory_space<vmem>>, vector<2x16x72xbf16>
    %139 = vector.shape_cast %138 : vector<2x16x72xbf16> to vector<32x72xbf16>
    %cst_203 = arith.constant dense<0.000000e+00> : vector<32x8xf32>
    %140 = tpu.matmul %139, %119, %cst_203 {dimension_numbers = #tpu.dot_dimension_numbers<[1], [0], [0], [1], [0, 0, 1, 1], [], []>} : vector<32x72xbf16>, vector<72x8xbf16>, vector<32x8xf32> -> vector<32x8xf32>
    %c0_204 = arith.constant 0 : index
    %c0_205 = arith.constant 0 : index
    %141 = vector.load %arg8[%c0_204, %c0_205] : memref<1x8xf32, #tpu.memory_space<vmem>>, vector<1x8xf32>
    %c0_206 = arith.constant 0 : index
    %c0_207 = arith.constant 0 : index
    %142 = vector.load %arg9[%c0_206, %c0_207] : memref<1x8xf32, #tpu.memory_space<vmem>>, vector<1x8xf32>
    %cst_208 = arith.constant dense<0.000000e+00> : vector<8xf32>
    %143 = vector.multi_reduction <add>, %140, %cst_208 [0] : vector<32x8xf32> to vector<8xf32>
    %144 = vector.shape_cast %143 : vector<8xf32> to vector<1x8xf32>
    %cst_209 = arith.constant 3.125000e-02 : f32
    %145 = vector.broadcast %cst_209 : f32 to vector<1x8xf32>
    %146 = arith.mulf %144, %145 : vector<1x8xf32>
    %147 = arith.mulf %140, %140 : vector<32x8xf32>
    %cst_210 = arith.constant dense<0.000000e+00> : vector<8xf32>
    %148 = vector.multi_reduction <add>, %147, %cst_210 [0] : vector<32x8xf32> to vector<8xf32>
    %149 = vector.shape_cast %148 : vector<8xf32> to vector<1x8xf32>
    %cst_211 = arith.constant 3.125000e-02 : f32
    %150 = vector.broadcast %cst_211 : f32 to vector<1x8xf32>
    %151 = arith.mulf %149, %150 : vector<1x8xf32>
    %152 = arith.mulf %146, %146 : vector<1x8xf32>
    %153 = arith.subf %151, %152 : vector<1x8xf32>
    %cst_212 = arith.constant 0.000000e+00 : f32
    %154 = vector.broadcast %cst_212 : f32 to vector<1x8xf32>
    %155 = arith.maximumf %153, %154 : vector<1x8xf32>
    %156 = vector.broadcast %146 : vector<1x8xf32> to vector<32x8xf32>
    %157 = arith.subf %140, %156 : vector<32x8xf32>
    %cst_213 = arith.constant 9.99999974E-6 : f32
    %158 = vector.broadcast %cst_213 : f32 to vector<1x8xf32>
    %159 = arith.addf %155, %158 : vector<1x8xf32>
    %160 = math.rsqrt %159 : vector<1x8xf32>
    %161 = vector.broadcast %160 : vector<1x8xf32> to vector<32x8xf32>
    %162 = arith.mulf %157, %161 : vector<32x8xf32>
    %163 = vector.broadcast %141 : vector<1x8xf32> to vector<32x8xf32>
    %164 = arith.mulf %162, %163 : vector<32x8xf32>
    %165 = vector.broadcast %142 : vector<1x8xf32> to vector<32x8xf32>
    %166 = arith.addf %164, %165 : vector<32x8xf32>
    %167 = vector.shape_cast %3 : vector<2x16x4xbf16> to vector<32x4xbf16>
    %c0_214 = arith.constant 0 : index
    %c0_215 = arith.constant 0 : index
    %168 = vector.load %arg10[%c0_214, %c0_215] : memref<4x8xbf16, #tpu.memory_space<vmem>>, vector<4x8xbf16>
    %cst_216 = arith.constant dense<0.000000e+00> : vector<32x8xf32>
    %169 = tpu.matmul %167, %168, %cst_216 {dimension_numbers = #tpu.dot_dimension_numbers<[1], [0], [0], [1], [0, 0, 1, 1], [], []>} : vector<32x4xbf16>, vector<4x8xbf16>, vector<32x8xf32> -> vector<32x8xf32>
    %c0_217 = arith.constant 0 : index
    %c0_218 = arith.constant 0 : index
    %170 = vector.load %arg11[%c0_217, %c0_218] : memref<1x8xf32, #tpu.memory_space<vmem>>, vector<1x8xf32>
    %c0_219 = arith.constant 0 : index
    %c0_220 = arith.constant 0 : index
    %171 = vector.load %arg12[%c0_219, %c0_220] : memref<1x8xf32, #tpu.memory_space<vmem>>, vector<1x8xf32>
    %cst_221 = arith.constant dense<0.000000e+00> : vector<8xf32>
    %172 = vector.multi_reduction <add>, %169, %cst_221 [0] : vector<32x8xf32> to vector<8xf32>
    %173 = vector.shape_cast %172 : vector<8xf32> to vector<1x8xf32>
    %cst_222 = arith.constant 3.125000e-02 : f32
    %174 = vector.broadcast %cst_222 : f32 to vector<1x8xf32>
    %175 = arith.mulf %173, %174 : vector<1x8xf32>
    %176 = arith.mulf %169, %169 : vector<32x8xf32>
    %cst_223 = arith.constant dense<0.000000e+00> : vector<8xf32>
    %177 = vector.multi_reduction <add>, %176, %cst_223 [0] : vector<32x8xf32> to vector<8xf32>
    %178 = vector.shape_cast %177 : vector<8xf32> to vector<1x8xf32>
    %cst_224 = arith.constant 3.125000e-02 : f32
    %179 = vector.broadcast %cst_224 : f32 to vector<1x8xf32>
    %180 = arith.mulf %178, %179 : vector<1x8xf32>
    %181 = arith.mulf %175, %175 : vector<1x8xf32>
    %182 = arith.subf %180, %181 : vector<1x8xf32>
    %cst_225 = arith.constant 0.000000e+00 : f32
    %183 = vector.broadcast %cst_225 : f32 to vector<1x8xf32>
    %184 = arith.maximumf %182, %183 : vector<1x8xf32>
    %185 = vector.broadcast %175 : vector<1x8xf32> to vector<32x8xf32>
    %186 = arith.subf %169, %185 : vector<32x8xf32>
    %cst_226 = arith.constant 9.99999974E-6 : f32
    %187 = vector.broadcast %cst_226 : f32 to vector<1x8xf32>
    %188 = arith.addf %184, %187 : vector<1x8xf32>
    %189 = math.rsqrt %188 : vector<1x8xf32>
    %190 = vector.broadcast %189 : vector<1x8xf32> to vector<32x8xf32>
    %191 = arith.mulf %186, %190 : vector<32x8xf32>
    %192 = vector.broadcast %170 : vector<1x8xf32> to vector<32x8xf32>
    %193 = arith.mulf %191, %192 : vector<32x8xf32>
    %194 = vector.broadcast %171 : vector<1x8xf32> to vector<32x8xf32>
    %195 = arith.addf %193, %194 : vector<32x8xf32>
    %196 = arith.addf %166, %195 : vector<32x8xf32>
    %cst_227 = arith.constant 0.000000e+00 : f32
    %197 = vector.broadcast %cst_227 : f32 to vector<32x8xf32>
    %198 = arith.cmpf oge, %196, %197 : vector<32x8xf32>
    %cst_228 = arith.constant 1.000000e-01 : f32
    %199 = vector.broadcast %cst_228 : f32 to vector<32x8xf32>
    %200 = arith.mulf %199, %196 : vector<32x8xf32>
    %201 = arith.select %198, %196, %200 : vector<32x8xi1>, vector<32x8xf32>
    %202 = vector.shape_cast %201 : vector<32x8xf32> to vector<2x16x8xf32>
    %c0_229 = arith.constant 0 : index
    %c0_230 = arith.constant 0 : index
    %c0_231 = arith.constant 0 : index
    %203 = vector.load %arg13[%c0_229, %c0_230, %c0_231] : memref<2x16x8xf32, #tpu.memory_space<vmem>>, vector<2x16x8xf32>
    tpu.vector_store %arg13[%c0_229, %c0_230, %c0_231], %202 {strides = array<i32>} : memref<2x16x8xf32, #tpu.memory_space<vmem>>, vector<2x16x8xf32>,
    return
  }
}

</mosaic_0001>

<bundles_post_ra>
// kernel: tpu_custom_call.1
= control target key start
LH: loop header
LB: loop body
LE: loop exit
PB: predicated region body
PF: predicated region fallthrough
CT: control target
= control target key end

     0   :  { %vm45_vm0 = vcmask 27648   ;;  %v2383_v0 = vmov 0   ;;  %vm2832_vm1 = vcmask 1041408   ;;  %vm69_vm2 = vcmask 1045508   ;;  %s2384_s16 = smov 16   ;;  %s2385_s17 = smov 8   ;;  %s2817_s0 = inlined_call_operand.vmem [shape: f32[2,16,4], index: 0, kind: input, shape index: {}]   ;;  %s2818_s1 = inlined_call_operand.vmem [shape: bf16[36,8], index: 1, kind: input, shape index: {}]   ;;  %s2819_s2 = inlined_call_operand.vmem [shape: f32[1,8], index: 2, kind: input, shape index: {}]   ;;  %s2820_s3 = inlined_call_operand.vmem [shape: f32[1,8], index: 3, kind: input, shape index: {}]   ;;  %s2821_s4 = inlined_call_operand.vmem [shape: bf16[72,8], index: 4, kind: input, shape index: {}]   ;;  %s2822_s10 = inlined_call_operand.vmem [shape: bf16[4,8], index: 10, kind: input, shape index: {}]   ;;  %s2823_s5 = inlined_call_operand.vmem [shape: f32[1,8], index: 5, kind: input, shape index: {}]   ;;  %s2824_s6 = inlined_call_operand.vmem [shape: f32[1,8], index: 6, kind: input, shape index: {}]   ;;  %s2825_s7 = inlined_call_operand.vmem [shape: bf16[72,8], index: 7, kind: input, shape index: {}]   ;;  %s2826_s11 = inlined_call_operand.vmem [shape: f32[1,8], index: 11, kind: input, shape index: {}]   ;;  %s2827_s8 = inlined_call_operand.vmem [shape: f32[1,8], index: 8, kind: input, shape index: {}]   ;;  %s2828_s12 = inlined_call_operand.vmem [shape: f32[1,8], index: 12, kind: input, shape index: {}]   ;;  %s2829_s9 = inlined_call_operand.vmem [shape: f32[1,8], index: 9, kind: input, shape index: {}]   ;;  %s2830_s13 = inlined_call_operand.vmem [shape: f32[2,16,8], index: 13, kind: output, shape index: {}]  }
   0x1   :  { %46 = vst.msk [vmem:[#allocation2] sm:$0xf] %vm45_vm0, %v2383_v0  ;;  %47 = vst.msk [vmem:[#allocation2 + $0x4] sm:$0xf] %vm45_vm0, %v2383_v0  ;;  %v52_v1 = vld [vmem:[%s2817_s0] sm:$0xff]  ;;  %v53_v2 = vld [vmem:[%s2817_s0 + $0x8] sm:$0xff] }
   0x2   :  { %48 = vst.msk [vmem:[#allocation2 + $0x8] sm:$0xf] %vm45_vm0, %v2383_v0  ;;  %49 = vst.msk [vmem:[#allocation2 + $0xc] sm:$0xf] %vm45_vm0, %v2383_v0  ;;  %v2167_v3 = vpack.c.bf16 %v52_v1, %v52_v1  ;;  %v2168_v4 = vpack.c.bf16 %v53_v2, %v53_v2  ;;  %v54_v5 = vld [vmem:[%s2817_s0 + $0x10] sm:$0xff]  ;;  %v55_v6 = vld [vmem:[%s2817_s0 + $0x18] sm:$0xff] }
   0x3   :  { %50 = vst.msk [vmem:[#allocation2 + $0x10] sm:$0xf] %vm45_vm0, %v2383_v0  ;;  %51 = vst.msk [vmem:[#allocation2 + $0x14] sm:$0xf] %vm45_vm0, %v2383_v0  ;;  %vm87_vm3 = vcmask 27650   ;;  %v2169_v7 = vpack.c.bf16 %v54_v5, %v54_v5  ;;  %v2170_v8 = vpack.c.bf16 %v55_v6, %v55_v6  ;;  %vm90_vm5 = vcmask 25600  }
   0x4   :  { %v71_v9 = vrot.slane %v2167_v3, 6  ;;  %v73_v10 = vrot.slane %v2168_v4, 6  ;;  %vm2491_vm4 = vmor %vm2832_vm1, %vm69_vm2  ;;  %vm301_vm6 = vcmask 1045504   ;;  %vm197_vm7 = vcmask 1046528   ;;  %s2386_s18 = smov 24   ;;  %s2387_s19 = smov 4  }
   0x5   :  { %v76_v12 = vrot.slane %v2169_v7, 6  ;;  %v78_v13 = vrot.slane %v2170_v8, 6  ;;  %vm405_vm8 = vcmask 1044480   ;;  %vm141_vm9 = vsmask.f32 7424  ;;  %s2388_s20 = smov 12  }
   0x6   :  { %v72_v14 = vrot.slane %v71_v9, 4  ;;  %v75_v15 = vrot.slane %v73_v10, 4  ;;  %88 = vst.msk [vmem:[#allocation2] sm:$0xc] %vm87_vm3, %v71_v9  ;;  %vm235_vm10 = vsmask.f32 6400 }
   0x7   :  { %v77_v16 = vrot.slane %v76_v12, 4  ;;  %v80_v17 = vrot.slane %v78_v13, 4  ;;  %92 = vst.msk [vmem:[#allocation2 + $0xc] sm:$0xc] %vm87_vm3, %v76_v12  ;;  %vm2831_vm11 = vcmask 31744   ;;  %s2389_s23 = smov 20  }
   0x8   :  { %v74_v18 = vsel %vm2491_vm4, %v72_v14, %v73_v10  ;;  %91 = vst.msk [vmem:[#allocation2 + $0x8] sm:$0x3] %vm90_vm5, %v75_v15  ;;  %vm2835_vm12 = vsmask.f32 5376  ;;  %vm2834_vm13 = vsmask.f32 4352 }
   0x9   :  { %89 = vst.msk [vmem:[#allocation2 + $0x4] sm:$0xf] %vm45_vm0, %v74_v18  ;;  %v79_v19 = vsel %vm2491_vm4, %v77_v16, %v78_v13  ;;  %s2390_s26 = smov 28   ;;  %s2391_s29 = smov 32   ;;  %vm172_vm14 = vcmask 64544   ;;  %vm210_vm15 = vcmask 97344  }
   0xa   :  { %94 = vst.msk [vmem:[#allocation2 + $0x14] sm:$0x3] %vm90_vm5, %v80_v17  ;;  %vm314_vm2 = vcmask 162944   ;;  %vm380_vm3 = vcmask 195744   ;;  %vm418_vm5 = vcmask 228544   ;;  %s2394_s25 = smov 56  }
   0xb   :  { %93 = vst.msk [vmem:[#allocation2 + $0x10] sm:$0xf] %vm45_vm0, %v79_v19  ;;  %vm276_vm0 = vcmask 130144   ;;  %s2395_s28 = smov 64  }
   0xf   :  { %v2263_v20 = vld [vmem:[#allocation2 + $0x8] ss:$0 sps:$4 sm:$0x33]  }
  0x10   :  { %v2262_v21 = vld [vmem:[#allocation2] sm:$0xfc]   ;;  %v303_v22 = vrot.slane %v2263_v20, 2  ;;  %v2265_v26 = vld [vmem:[#allocation2 + $0x8] ss:$0 sps:$4 sm:$0x11]  }
  0x11   :  { %v2264_v23 = vld [vmem:[#allocation2] sm:$0xfe]   ;;  %v302_v25 = vrot.slane %v2262_v21, 2  ;;  %v199_v31 = vrot.slane %v2265_v26, 1 }
  0x12   :  { %v2272_v24 = vld [vmem:[#allocation2] sm:$0xff]   ;;  %v198_v27 = vrot.slane %v2264_v23, 1  ;;  %v2267_v32 = vld [vmem:[#allocation2 + $0x8] ss:$0 sps:$4 sm:$0x77]   ;;  %v2276_v49 = vld [vmem:[#allocation2 + $0xc] sm:$0xff]  }
  0x13   :  { %v2266_v28 = vld [vmem:[#allocation2] sm:$0xf8]   ;;  %v143_v29 = vshrl.u32 %v2272_v24, 16  ;;  %v304_v30 = vsel %vm301_vm6, %v302_v25, %v303_v22  ;;  %v2268_v34 = vld [vmem:[#allocation2 + $0xc] sm:$0xfe]   ;;  %v145_v35 = vshll.u32 %v2272_v24, 16 }
  0x14   :  { %308 = vrot.lane.b32.xlu0 %v304_v30, %s2384_s16  ;;  %v406_v33 = vrot.slane %v2266_v28, 3  ;;  %v200_v36 = vsel %vm197_vm7, %v198_v27, %v199_v31  ;;  %v407_v37 = vrot.slane %v2267_v32, 3  ;;  %v2269_v38 = vld [vmem:[#allocation2 + $0x14] ss:$0 sps:$4 sm:$0x11]   ;;  %v201_v39 = vrot.slane %v2268_v34, 1 }
  0x15   :  { %204 = vrot.lane.b32.xlu1 %v200_v36, %s2385_s17  ;;  %v2270_v40 = vld [vmem:[#allocation2 + $0xc] sm:$0xfc]   ;;  %v147_v41 = vrot.slane %v145_v35, 1  ;;  %v202_v43 = vrot.slane %v2269_v38, 1  ;;  %v155_v59 = vshrl.u32 %v2276_v49, 16  ;;  %v157_v60 = vshll.u32 %v2276_v49, 16 }
  0x16   :  { %v408_v42 = vsel %vm405_vm8, %v406_v33, %v407_v37  ;;  %v2271_v44 = vld [vmem:[#allocation2 + $0x14] ss:$0 sps:$4 sm:$0x33]   ;;  %v305_v45 = vrot.slane %v2270_v40, 2  ;;  %v2274_v52 = vld [vmem:[#allocation2 + $0xc] sm:$0xf8]  }
  0x17   :  { %v2273_v46 = vld [vmem:[#allocation2 + $0x8] ss:$0 sps:$4 sm:$0x11]   ;;  %v203_v47 = vsel %vm197_vm7, %v201_v39, %v202_v43  ;;  %v306_v48 = vrot.slane %v2271_v44, 2  ;;  %v148_v50 = vor.u32 %v147_v41, %v143_v29  ;;  %v409_v56 = vrot.slane %v2274_v52, 3  ;;  %v2292_v8 = vld [vmem:[#allocation2] sm:$0xff]  }
  0x18   :  { %412 = vrot.lane.b32.xlu0 %v408_v42, %s2386_s18  ;;  %v150_v51 = vshll.u32 %v2273_v46, 16  ;;  %v2275_v54 = vld [vmem:[#allocation2 + $0x14] ss:$0 sps:$4 sm:$0x77]   ;;  %v159_v63 = vrot.slane %v157_v60, 1  ;;  %117 = vst.msk [vmem:[#allocation4] sm:$0xff] %vm2831_vm11, %v2292_v8 }
  0x19   :  { %206 = vrot.lane.b32.xlu1 %v203_v47, %s2385_s17  ;;  %v307_v53 = vsel %vm301_vm6, %v305_v45, %v306_v48  ;;  %v410_v57 = vrot.slane %v2275_v54, 3  ;;  %v2277_v58 = vld [vmem:[#allocation2 + $0x14] ss:$0 sps:$4 sm:$0x11]   ;;  %v2278_v2 = vld [vmem:[#allocation2 + $0xc] sm:$0xfe]  }
  0x1a   :  { %v152_v55 = vrot.slane %v150_v51, 1  ;;  %v162_v1 = vshll.u32 %v2277_v58, 16  ;;  %v2279_v3 = vld [vmem:[#allocation2 + $0x14] ss:$0 sps:$4 sm:$0x33]   ;;  %v160_v4 = vor.u32 %v159_v63, %v155_v59  ;;  %v254_v6 = vshrl.u32 %v2278_v2, 16 }
  0x1b   :  { %v411_v62 = vsel %vm405_vm8, %v409_v56, %v410_v57  ;;  %v257_v7 = vshll.u32 %v2278_v2, 16  ;;  %v262_v9 = vshrl.u32 %v2279_v3, 16  ;;  %v265_v10 = vshll.u32 %v2279_v3, 16  ;;  %v2280_v12 = vld [vmem:[#allocation2] sm:$0xfe]   ;;  %v2293_v29 = vld [vmem:[#allocation2 + $0xc] sm:$0xff]  }
  0x1c   :  { %v153_v61 = vsel %vm141_vm9, %v148_v50, %v152_v55  ;;  %v164_v5 = vrot.slane %v162_v1, 1  ;;  %v256_v14 = vrot.slane %v254_v6, 1  ;;  %v2281_v16 = vld [vmem:[#allocation2 + $0x8] ss:$0 sps:$4 sm:$0x33]   ;;  %v237_v19 = vshrl.u32 %v2280_v12, 16 }
  0x1d   :  { %310 = vrot.lane.b32.xlu1 %v307_v53, %s2384_s16  ;;  %166 = vrot.lane.b32.xlu0 %v153_v61, %s2387_s19  ;;  %v259_v15 = vrot.slane %v257_v7, 2  ;;  %v264_v17 = vrot.slane %v262_v9, 1  ;;  %v267_v18 = vrot.slane %v265_v10, 2  ;;  %v240_v20 = vshll.u32 %v2280_v12, 16  ;;  %v2282_v24 = vld [vmem:[#allocation2 + $0xc] sm:$0xfc]  }
  0x1e   :  { %v165_v13 = vsel %vm141_vm9, %v160_v4, %v164_v5  ;;  %v245_v22 = vshrl.u32 %v2281_v16, 16  ;;  %v248_v23 = vshll.u32 %v2281_v16, 16  ;;  %v239_v26 = vrot.slane %v237_v19, 1  ;;  %v2283_v28 = vld [vmem:[#allocation2 + $0x14] ss:$0 sps:$4 sm:$0x77]  }
  0x1f   :  { %v260_v21 = vor.u32 %v259_v15, %v256_v14  ;;  %v268_v25 = vor.u32 %v267_v18, %v264_v17  ;;  %v242_v27 = vrot.slane %v240_v20, 2  ;;  %v358_v32 = vshrl.u32 %v2282_v24, 16  ;;  %118 = vst.msk [vmem:[#allocation4 + $0x8] sm:$0xff] %vm2831_vm11, %v2293_v29  ;;  %v2284_v41 = vld [vmem:[#allocation2] sm:$0xfc]   ;;  %v2295_v3 = vld [vmem:[%s2818_s1 + $0x8] sm:$0xff]  }
  0x20   :  { %v247_v30 = vrot.slane %v245_v22, 1  ;;  %v250_v31 = vrot.slane %v248_v23, 2  ;;  %v361_v33 = vshll.u32 %v2282_v24, 16  ;;  %v366_v36 = vshrl.u32 %v2283_v28, 16  ;;  %v2286_v52 = vld [vmem:[#allocation2] sm:$0xf8]  }
  0x21   :  { %414 = vrot.lane.b32.xlu1 %v411_v62, %s2386_s18  ;;  %168 = vrot.lane.b32.xlu0 %v165_v13, %s2387_s19  ;;  %v269_v34 = vsel %vm235_vm10, %v260_v21, %v268_v25  ;;  %v243_v35 = vor.u32 %v242_v27, %v239_v26  ;;  %v369_v37 = vshll.u32 %v2283_v28, 16  ;;  %v360_v39 = vrot.slane %v358_v32, 2  ;;  %v2285_v44 = vld [vmem:[#allocation2 + $0x8] ss:$0 sps:$4 sm:$0x77]   ;;  %v2294_v60 = vld [vmem:[%s2818_s1] sm:$0xff]  }
  0x22   :  { %v251_v38 = vor.u32 %v250_v31, %v247_v30  ;;  %v363_v40 = vrot.slane %v361_v33, 3  ;;  %v368_v42 = vrot.slane %v366_v36, 2  ;;  %v341_v47 = vshrl.u32 %v2284_v41, 16  ;;  %v2287_v53 = vld [vmem:[#allocation2 + $0x8] ss:$0 sps:$4 sm:$0xff]   ;;  %2201 = vmatprep.subr.bf16.mxu0 %v2294_v60  ;;  %v2291_v28 = vld [vmem:[#allocation2 + $0x10] sm:$0xff]  }
  0x23   :  { %v371_v43 = vrot.slane %v369_v37, 3  ;;  %v344_v48 = vshll.u32 %v2284_v41, 16  ;;  %v349_v50 = vshrl.u32 %v2285_v44, 16  ;;  %v352_v51 = vshll.u32 %v2285_v44, 16  ;;  %v2288_v2 = vld [vmem:[#allocation2 + $0xc] sm:$0xf8]   ;;  %2202 = vmatpush3.bf16.msra.mxu0 %v2294_v60 }
  0x24   :  { %v252_v45 = vsel %vm235_vm10, %v243_v35, %v251_v38  ;;  %v364_v46 = vor.u32 %v363_v40, %v360_v39  ;;  %v343_v54 = vrot.slane %v341_v47, 2  ;;  %v445_v59 = vshrl.u32 %v2286_v52, 16  ;;  %v2289_v6 = vld [vmem:[#allocation2 + $0x14] ss:$0 sps:$4 sm:$0xff]   ;;  %2203 = vmatprep.subr.bf16.mxu0 %v2295_v3  ;;  %v2290_v25 = vld [vmem:[#allocation2 + $0x4] sm:$0xff]  }
  0x25   :  { %272 = vrot.lane.b32.xlu1 %v269_v34, %s2388_s20  ;;  %270 = vrot.lane.b32.xlu0 %v252_v45, %s2388_s20  ;;  %v372_v49 = vor.u32 %v371_v43, %v368_v42  ;;  %v346_v55 = vrot.slane %v344_v48, 3  ;;  %v351_v57 = vrot.slane %v349_v50, 2  ;;  %v354_v58 = vrot.slane %v352_v51, 3  ;;  %v2296_v27 = vld [vmem:[%s2818_s1 + $0x10] ss:$0 sps:$4 sm:$0x33]  }
  0x26   :  { %v448_v62 = vshll.u32 %v2286_v52, 16  ;;  %v453_v63 = vshrl.u32 %v2287_v53, 16  ;;  %v456_v1 = vshll.u32 %v2287_v53, 16  ;;  %v447_v5 = vrot.slane %v445_v59, 3  ;;  %s2393_s20 = smov 40  }
  0x27   :  { %v373_v56 = vsel %vm2835_vm12, %v364_v46, %v372_v49  ;;  %v347_v61 = vor.u32 %v346_v55, %v343_v54  ;;  %v355_v4 = vor.u32 %v354_v58, %v351_v57  ;;  %v462_v10 = vshrl.u32 %v2288_v2, 16  ;;  %2204 = vmatpush3.bf16.msra.mxu0 %v2295_v3 }
  0x28   :  { %v450_v7 = vrot.slane %v448_v62, 4  ;;  %v455_v8 = vrot.slane %v453_v63, 3  ;;  %v458_v9 = vrot.slane %v456_v1, 4  ;;  %v465_v13 = vshll.u32 %v2288_v2, 16  ;;  %2245 = vmatprep.subr.msk.bf16.mxu0 %vm2832_vm1, %v2296_v27 }
  0x29   :  { %376 = vrot.lane.b32.xlu1 %v373_v56, %s2389_s23  ;;  %v356_v12 = vsel %vm2835_vm12, %v347_v61, %v355_v4  ;;  %v470_v14 = vshrl.u32 %v2289_v6, 16  ;;  %v473_v15 = vshll.u32 %v2289_v6, 16  ;;  %v464_v18 = vrot.slane %v462_v10, 3 }
  0x2a   :  { %374 = vrot.lane.b32.xlu0 %v356_v12, %s2389_s23  ;;  %v451_v16 = vor.u32 %v450_v7, %v447_v5  ;;  %v459_v17 = vor.u32 %v458_v9, %v455_v8  ;;  %v467_v19 = vrot.slane %v465_v13, 4  ;;  %v536_v29 = vsel %vm2832_vm1, %v2296_v27, 0 }
  0x2b   :  { %v472_v20 = vrot.slane %v470_v14, 3  ;;  %v475_v21 = vrot.slane %v473_v15, 4  ;;  %2206 = vmatpush3.bf16.msra.mxu0 %v536_v29  ;;  %vm484_vm11 = vcmask 261344   ;;  %vm705_vm1 = vcmask 58368  }
  0x2c   :  { %v460_v22 = vsel %vm2834_vm13, %v451_v16, %v459_v17  ;;  %v468_v23 = vor.u32 %v467_v19, %v464_v18 }
  0x2d   :  { %v476_v24 = vor.u32 %v475_v21, %v472_v20 }
  0x2e   :  { %478 = vrot.lane.b32.xlu0 %v460_v22, %s2390_s26 }
  0x2f   :  { %v477_v26 = vsel %vm2834_vm13, %v468_v23, %v476_v24 }
  0x30   :  { %480 = vrot.lane.b32.xlu1 %v477_v26, %s2390_s26 }
  0x32   :  { %501 = vrot.lane.b32.xlu0 %v2290_v25, %s2391_s29 }
  0x34   :  { %503 = vrot.lane.b32.xlu1 %v2291_v28, %s2391_s29 }
  0x86   :  { %v309_v30 = vpop.permute.xlu0 %308 }
  0x87   :  { %v205_v31 = vpop.permute.xlu1 %204 }
  0x8a   :  { %v413_v32 = vpop.permute.xlu0 %412 }
  0x8b   :  { %v207_v33 = vpop.permute.xlu1 %206 }
  0x8f   :  { %v311_v34 = vpop.permute.xlu1 %310  ;;  %v167_v35 = vpop.permute.xlu0 %166 }
  0x90   :  { %173 = vst.msk [vmem:[#allocation4] sm:$0xff] %vm172_vm14, %v167_v35  ;;  %v2072_v35 = vld [vmem:[%s2820_s3] ss:$0 sm:$0xff] }
  0x91   :  { %211 = vst.msk [vmem:[#allocation4] sm:$0xff] %vm210_vm15, %v205_v31 }
  0x93   :  { %v415_v36 = vpop.permute.xlu1 %414  ;;  %v169_v37 = vpop.permute.xlu0 %168 }
  0x94   :  { %174 = vst.msk [vmem:[#allocation4 + $0x8] sm:$0xff] %vm172_vm14, %v169_v37  ;;  %vm507_vm14 = vcmask 294144  }
  0x95   :  { %212 = vst.msk [vmem:[#allocation4 + $0x8] sm:$0xff] %vm210_vm15, %v207_v33  ;;  %vm527_vm15 = vcmask 293888  }
  0x97   :  { %v273_v38 = vpop.permute.xlu1 %272  ;;  %v271_v39 = vpop.permute.xlu0 %270 }
  0x98   :  { %278 = vst.msk [vmem:[#allocation4 + $0x8] sm:$0xff] %vm276_vm0, %v273_v38  ;;  %277 = vst.msk [vmem:[#allocation4] sm:$0xff] %vm276_vm0, %v271_v39  ;;  %vm667_vm0 = vcmask 60416  }
  0x99   :  { %316 = vst.msk [vmem:[#allocation4 + $0x8] sm:$0xff] %vm314_vm2, %v311_v34  ;;  %315 = vst.msk [vmem:[#allocation4] sm:$0xff] %vm314_vm2, %v309_v30  ;;  %v2071_v30 = vld [vmem:[%s2819_s2] ss:$0 sm:$0xff]  ;;  %s2392_s2 = smov 48  }
  0x9a   :  { %668 = vst.msk [vmem:[#allocation3] sm:$0xf] %vm667_vm0, %v2383_v0  ;;  %669 = vst.msk [vmem:[#allocation3 + $0x4] sm:$0xf] %vm667_vm0, %v2383_v0 }
  0x9b   :  { %v377_v40 = vpop.permute.xlu1 %376  ;;  %670 = vst.msk [vmem:[#allocation3 + $0x8] sm:$0xf] %vm667_vm0, %v2383_v0  ;;  %671 = vst.msk [vmem:[#allocation3 + $0xc] sm:$0xf] %vm667_vm0, %v2383_v0 }
  0x9c   :  { %382 = vst.msk [vmem:[#allocation4 + $0x8] sm:$0xff] %vm380_vm3, %v377_v40  ;;  %v375_v41 = vpop.permute.xlu0 %374 }
  0x9d   :  { %420 = vst.msk [vmem:[#allocation4 + $0x8] sm:$0xff] %vm418_vm5, %v415_v36 }
  0x9e   :  { %381 = vst.msk [vmem:[#allocation4] sm:$0xff] %vm380_vm3, %v375_v41 }
  0x9f   :  { %419 = vst.msk [vmem:[#allocation4] sm:$0xff] %vm418_vm5, %v413_v32 }
  0xa0   :  { %v479_v42 = vpop.permute.xlu0 %478  ;;  %672 = vst.msk [vmem:[#allocation3 + $0x10] sm:$0xf] %vm667_vm0, %v2383_v0  ;;  %673 = vst.msk [vmem:[#allocation3 + $0x14] sm:$0xf] %vm667_vm0, %v2383_v0 }
  0xa1   :  { %485 = vst.msk [vmem:[#allocation4] sm:$0xff] %vm484_vm11, %v479_v42 }
  0xa2   :  { %v481_v43 = vpop.permute.xlu1 %480 }
  0xa3   :  { %486 = vst.msk [vmem:[#allocation4 + $0x8] sm:$0xff] %vm484_vm11, %v481_v43  ;;  %vm589_vm11 = vcmask 64512  }
  0xa4   :  { %v502_v44 = vpop.permute.xlu0 %501 }
  0xa5   :  { %508 = vst.msk [vmem:[#allocation4] sm:$0xff] %vm507_vm14, %v502_v44 }
  0xa6   :  { %v504_v45 = vpop.permute.xlu1 %503 }
  0xa7   :  { %509 = vst.msk [vmem:[#allocation4 + $0x8] sm:$0xff] %vm507_vm14, %v504_v45 }
  0xac   :  { %v510_v46 = vld [vmem:[#allocation4] sm:$0xff] }
  0xad   :  { %2207 = vmatprep.mubr.msk.bf16.mxu0 %vm527_vm15, %v510_v46 }
  0xae   :  { %v511_v47 = vld [vmem:[#allocation4 + $0x8] sm:$0xff] }
  0xaf   :  { %2208 = vmatmul.mubr.msk.bf16.vlgmr.msra.gmra.mrb[0].mxu0 %vm527_vm15, %v511_v47  ;;  %vm702_vm15 = vcmask 60418  }
 0x182   :  { %v2209_v48 = vpop.f32.mrb[0].mxu0 }
 0x183   :  { %v572_v49 = vpop.f32.mrb[1].mxu0  ;;  %v606_v53 = vmul.f32 %v2209_v48, %v2209_v48  ;;  %v593_v58 = vsel %vm589_vm11, %v2209_v48, 0.0 }
 0x184   :  { %v604_v50 = vmul.f32 %v572_v49, %v572_v49  ;;  %v2210_v51 = vpop.f32.mrb[2].mxu0  ;;  %v590_v54 = vsel %vm589_vm11, %v572_v49, 0.0 }
 0x185   :  { %v575_v52 = vpop.f32.mrb[3].mxu0  ;;  %v607_v60 = vmul.f32 %v2210_v51, %v2210_v51  ;;  %v611_v63 = vsel %vm589_vm11, %v606_v53, 0.0  ;;  %v595_v1 = vsel %vm589_vm11, %v2210_v51, 0.0 }
 0x186   :  { %v591_v55 = vsel %vm589_vm11, %v575_v52, 0.0  ;;  %v605_v56 = vmul.f32 %v575_v52, %v575_v52  ;;  %v608_v59 = vsel %vm589_vm11, %v604_v50, 0.0 }
 0x187   :  { %v592_v57 = vadd.f32 %v591_v55, %v590_v54  ;;  %v613_v4 = vsel %vm589_vm11, %v607_v60, 0.0 }
 0x188   :  { %v609_v0 = vsel %vm589_vm11, %v605_v56, 0.0 }
 0x189   :  { %v594_v61 = vadd.f32 %v593_v58, %v592_v57  ;;  %v610_v62 = vadd.f32 %v609_v0, %v608_v59 }
 0x18b   :  { %v596_v2 = vadd.f32 %v595_v1, %v594_v61  ;;  %v612_v3 = vadd.f32 %v611_v63, %v610_v62 }
 0x18d   :  { %v597_v5 = vrot.slane %v596_v2, 4  ;;  %v614_v6 = vadd.f32 %v613_v4, %v612_v3 }
 0x18f   :  { %v598_v7 = vadd.f32 %v597_v5, %v596_v2  ;;  %v615_v8 = vrot.slane %v614_v6, 4 }
 0x191   :  { %v599_v9 = vrot.slane %v598_v7, 2  ;;  %v616_v10 = vadd.f32 %v615_v8, %v614_v6 }
 0x193   :  { %v600_v12 = vadd.f32 %v599_v9, %v598_v7  ;;  %v617_v13 = vrot.slane %v616_v10, 2 }
 0x195   :  { %v601_v14 = vrot.slane %v600_v12, 1  ;;  %v618_v15 = vadd.f32 %v617_v13, %v616_v10 }
 0x197   :  { %v602_v16 = vadd.f32 %v601_v14, %v600_v12  ;;  %v619_v17 = vrot.slane %v618_v15, 1 }
 0x199   :  { %v603_v18 = vmul.f32 0.03125, %v602_v16  ;;  %v620_v19 = vadd.f32 %v619_v17, %v618_v15 }
 0x19b   :  { %v621_v20 = vmul.f32 0.03125, %v620_v19  ;;  %v622_v21 = vmul.f32 %v603_v18, %v603_v18  ;;  %v625_v22 = vsub.f32 %v572_v49, %v603_v18  ;;  %v626_v23 = vsub.f32 %v575_v52, %v603_v18 }
 0x19c   :  { %v627_v24 = vsub.f32 %v2209_v48, %v603_v18  ;;  %v628_v25 = vsub.f32 %v2210_v51, %v603_v18 }
 0x19d   :  { %v623_v26 = vsub.f32 %v621_v20, %v622_v21 }
 0x19f   :  { %v624_v27 = vmax.f32 %v623_v26, 0.0 }
 0x1a1   :  { %v629_v28 = vadd.f32 1e-05, %v624_v27 }
 0x1a3   :  { %2371 = vrsqrt.f32 %v629_v28 }
 0x1ad   :  { %v2372_v29 = vpop.eup %2371 }
 0x1ae   :  { %v631_v31 = vmul.f32 %v2372_v29, %v625_v22  ;;  %v632_v32 = vmul.f32 %v2372_v29, %v626_v23  ;;  %v633_v33 = vmul.f32 %v2372_v29, %v627_v24  ;;  %v634_v34 = vmul.f32 %v2372_v29, %v628_v25 }
 0x1b0   :  { %v641_v36 = vmul.f32 %v2071_v30, %v631_v31  ;;  %v642_v37 = vmul.f32 %v2071_v30, %v632_v32  ;;  %v643_v38 = vmul.f32 %v2071_v30, %v633_v33  ;;  %v644_v39 = vmul.f32 %v2071_v30, %v634_v34 }
 0x1b2   :  { %v651_v40 = vadd.f32 %v2072_v35, %v641_v36  ;;  %v652_v41 = vadd.f32 %v2072_v35, %v642_v37  ;;  %v653_v42 = vadd.f32 %v2072_v35, %v643_v38  ;;  %v654_v43 = vadd.f32 %v2072_v35, %v644_v39 }
 0x1b4   :  { %vm655_vm2 = vcmp.ge.f32.partialorder %v651_v40, 0.0  ;;  %vm656_vm3 = vcmp.ge.f32.partialorder %v652_v41, 0.0  ;;  %vm657_vm5 = vcmp.ge.f32.partialorder %v653_v42, 0.0  ;;  %vm658_vm14 = vcmp.ge.f32.partialorder %v654_v43, 0.0 }
 0x1b5   :  { %v659_v44 = vmul.f32 0.1, %v651_v40  ;;  %v660_v45 = vmul.f32 0.1, %v652_v41  ;;  %v661_v46 = vmul.f32 0.1, %v653_v42 }
 0x1b6   :  { %v662_v47 = vmul.f32 0.1, %v654_v43 }
 0x1b7   :  { %v663_v48 = vsel %vm655_vm2, %v651_v40, %v659_v44  ;;  %v664_v49 = vsel %vm656_vm3, %v652_v41, %v660_v45  ;;  %v665_v50 = vsel %vm657_vm5, %v653_v42, %v661_v46  ;;  %vm2833_vm2 = vcmask 1043456  }
 0x1b8   :  { %v666_v51 = vsel %vm658_vm14, %v654_v43, %v662_v47  ;;  %v2171_v52 = vpack.c.bf16 %v663_v48, %v663_v48  ;;  %v2172_v53 = vpack.c.bf16 %v664_v49, %v664_v49  ;;  %v2173_v54 = vpack.c.bf16 %v665_v50, %v665_v50 }
 0x1b9   :  { %v2174_v55 = vpack.c.bf16 %v666_v51, %v666_v51  ;;  %vm2837_vm3 = vcmask 130112   ;;  %vm2836_vm5 = vcmask 195712   ;;  %vm891_vm14 = vcmask 261312  }
 0x1ba   :  { %v686_v56 = vrot.slane %v2171_v52, 6  ;;  %v688_v57 = vrot.slane %v2172_v53, 6  ;;  %v691_v58 = vrot.slane %v2173_v54, 6 }
 0x1bb   :  { %v693_v59 = vrot.slane %v2174_v55, 6 }
 0x1bc   :  { %v687_v60 = vrot.slane %v686_v56, 4  ;;  %v690_v0 = vrot.slane %v688_v57, 4  ;;  %v692_v61 = vrot.slane %v691_v58, 4  ;;  %703 = vst.msk [vmem:[#allocation3] sm:$0xc] %vm702_vm15, %v686_v56 }
 0x1bd   :  { %707 = vst.msk [vmem:[#allocation3 + $0xc] sm:$0xc] %vm702_vm15, %v691_v58  ;;  %v695_v62 = vrot.slane %v693_v59, 4 }
 0x1be   :  { %v689_v63 = vsel %vm2491_vm4, %v687_v60, %v688_v57  ;;  %v694_v1 = vsel %vm2491_vm4, %v692_v61, %v693_v59  ;;  %706 = vst.msk [vmem:[#allocation3 + $0x8] sm:$0x3] %vm705_vm1, %v690_v0 }
 0x1bf   :  { %704 = vst.msk [vmem:[#allocation3 + $0x4] sm:$0xf] %vm667_vm0, %v689_v63  ;;  %708 = vst.msk [vmem:[#allocation3 + $0x10] sm:$0xf] %vm667_vm0, %v694_v1 }
 0x1c0   :  { %709 = vst.msk [vmem:[#allocation3 + $0x14] sm:$0x3] %vm705_vm1, %v695_v62 }
 0x1c5   :  { %v2300_v2 = vld [vmem:[#allocation3 + $0x8] ss:$0 sps:$4 sm:$0x11]  }
 0x1c6   :  { %v2297_v3 = vld [vmem:[#allocation3 + $0xc] sm:$0xfe]   ;;  %v2299_v6 = vld [vmem:[#allocation3] sm:$0xfe]   ;;  %v815_v7 = vrot.slane %v2300_v2, 1 }
 0x1c7   :  { %v2298_v4 = vld [vmem:[#allocation3 + $0x14] ss:$0 sps:$4 sm:$0x11]   ;;  %v817_v5 = vrot.slane %v2297_v3, 1  ;;  %v2301_v9 = vld [vmem:[#allocation3 + $0xc] sm:$0xfc]  }
 0x1c8   :  { %v818_v8 = vrot.slane %v2298_v4, 1  ;;  %v2309_v10 = vld [vmem:[#allocation3 + $0xc] sm:$0xff]   ;;  %v814_v12 = vrot.slane %v2299_v6, 1  ;;  %v2302_v13 = vld [vmem:[#allocation3 + $0x14] ss:$0 sps:$4 sm:$0x33]  }
 0x1c9   :  { %v919_v15 = vrot.slane %v2301_v9, 2  ;;  %v2303_v16 = vld [vmem:[#allocation3] sm:$0xfc]   ;;  %v920_v18 = vrot.slane %v2302_v13, 2  ;;  %v2305_v21 = vld [vmem:[#allocation3 + $0xc] sm:$0xf8]  }
 0x1ca   :  { %v819_v14 = vsel %vm197_vm7, %v817_v5, %v818_v8  ;;  %v816_v17 = vsel %vm197_vm7, %v814_v12, %v815_v7  ;;  %v2304_v19 = vld [vmem:[#allocation3 + $0x8] ss:$0 sps:$4 sm:$0x33]   ;;  %v916_v20 = vrot.slane %v2303_v16, 2  ;;  %v774_v22 = vshll.u32 %v2309_v10, 16  ;;  %v2311_v23 = vld [vmem:[#allocation3] sm:$0xff]  }
 0x1cb   :  { %822 = vrot.lane.b32.xlu1 %v819_v14, %s2384_s16  ;;  %820 = vrot.lane.b32.xlu0 %v816_v17, %s2384_s16  ;;  %v917_v24 = vrot.slane %v2304_v19, 2  ;;  %v2306_v25 = vld [vmem:[#allocation3 + $0x14] ss:$0 sps:$4 sm:$0x77]   ;;  %v921_v26 = vsel %vm301_vm6, %v919_v15, %v920_v18  ;;  %v1021_v27 = vrot.slane %v2305_v21, 3  ;;  %v772_v34 = vshrl.u32 %v2309_v10, 16 }
 0x1cc   :  { %v2307_v28 = vld [vmem:[#allocation3] sm:$0xf8]   ;;  %v776_v29 = vrot.slane %v774_v22, 1  ;;  %v1022_v31 = vrot.slane %v2306_v25, 3  ;;  %v762_v38 = vshll.u32 %v2311_v23, 16  ;;  %v760_v43 = vshrl.u32 %v2311_v23, 16 }
 0x1cd   :  { %v918_v30 = vsel %vm301_vm6, %v916_v20, %v917_v24  ;;  %v2308_v32 = vld [vmem:[#allocation3 + $0x8] ss:$0 sps:$4 sm:$0x77]   ;;  %v1018_v33 = vrot.slane %v2307_v28, 3  ;;  %v2313_v47 = vld [vmem:[#allocation3 + $0xc] sm:$0xfe]  }
 0x1ce   :  { %v1019_v35 = vrot.slane %v2308_v32, 3  ;;  %v2310_v36 = vld [vmem:[#allocation3 + $0x14] ss:$0 sps:$4 sm:$0x11]   ;;  %v1023_v37 = vsel %vm405_vm8, %v1021_v27, %v1022_v31  ;;  %v777_v40 = vor.u32 %v776_v29, %v772_v34  ;;  %v764_v44 = vrot.slane %v762_v38, 1  ;;  %v2327_v54 = vld [vmem:[#allocation3 + $0xc] sm:$0xff]  }
 0x1cf   :  { %924 = vrot.lane.b32.xlu1 %v921_v26, %s2391_s29  ;;  %922 = vrot.lane.b32.xlu0 %v918_v30, %s2391_s29  ;;  %v779_v41 = vshll.u32 %v2310_v36, 16  ;;  %v2312_v42 = vld [vmem:[#allocation3 + $0x8] ss:$0 sps:$4 sm:$0x11]   ;;  %v869_v52 = vshrl.u32 %v2313_v47, 16  ;;  %v872_v53 = vshll.u32 %v2313_v47, 16 }
 0x1d0   :  { %v1020_v39 = vsel %vm405_vm8, %v1018_v33, %v1019_v35  ;;  %v767_v46 = vshll.u32 %v2312_v42, 16  ;;  %v765_v48 = vor.u32 %v764_v44, %v760_v43  ;;  %v2314_v49 = vld [vmem:[#allocation3 + $0x14] ss:$0 sps:$4 sm:$0x33]   ;;  %v2315_v57 = vld [vmem:[#allocation3] sm:$0xfe]  }
 0x1d1   :  { %v781_v45 = vrot.slane %v779_v41, 1  ;;  %v877_v55 = vshrl.u32 %v2314_v49, 16  ;;  %v880_v56 = vshll.u32 %v2314_v49, 16  ;;  %v871_v59 = vrot.slane %v869_v52, 1  ;;  %736 = vst.msk [vmem:[#allocation5 + $0x8] sm:$0xff] %vm589_vm11, %v2327_v54  ;;  %v2328_v61 = vld [vmem:[#allocation3] sm:$0xff]  }
 0x1d2   :  { %v769_v51 = vrot.slane %v767_v46, 1  ;;  %v874_v60 = vrot.slane %v872_v53, 2  ;;  %v2316_v0 = vld [vmem:[#allocation3 + $0x8] ss:$0 sps:$4 sm:$0x33]   ;;  %v852_v1 = vshrl.u32 %v2315_v57, 16 }
 0x1d3   :  { %1026 = vrot.lane.b32.xlu1 %v1023_v37, %s2392_s2  ;;  %1024 = vrot.lane.b32.xlu0 %v1020_v39, %s2392_s2  ;;  %v782_v50 = vsel %vm141_vm9, %v777_v40, %v781_v45  ;;  %v879_v62 = vrot.slane %v877_v55, 1  ;;  %v882_v63 = vrot.slane %v880_v56, 2  ;;  %v855_v2 = vshll.u32 %v2315_v57, 16  ;;  %v2317_v6 = vld [vmem:[#allocation3 + $0xc] sm:$0xfc]   ;;  %735 = vst.msk [vmem:[#allocation5] sm:$0xff] %vm589_vm11, %v2328_v61 }
 0x1d4   :  { %v770_v58 = vsel %vm141_vm9, %v765_v48, %v769_v51  ;;  %v875_v3 = vor.u32 %v874_v60, %v871_v59  ;;  %v860_v4 = vshrl.u32 %v2316_v0, 16  ;;  %v863_v5 = vshll.u32 %v2316_v0, 16  ;;  %v2318_v10 = vld [vmem:[#allocation3 + $0x14] ss:$0 sps:$4 sm:$0x77]   ;;  %v2329_v42 = vld [vmem:[%s2821_s4] sm:$0xff]  }
 0x1d5   :  { %v883_v7 = vor.u32 %v882_v63, %v879_v62  ;;  %v854_v8 = vrot.slane %v852_v1, 1  ;;  %v857_v9 = vrot.slane %v855_v2, 2  ;;  %v971_v14 = vshrl.u32 %v2317_v6, 16  ;;  %v2319_v23 = vld [vmem:[#allocation3] sm:$0xfc]   ;;  %v2330_v48 = vld [vmem:[%s2821_s4 + $0x8] sm:$0xff]   ;;  %2211 = vmatprep.subr.bf16.mxu1 %v2329_v42 }
 0x1d6   :  { %v862_v12 = vrot.slane %v860_v4, 1  ;;  %v865_v13 = vrot.slane %v863_v5, 2  ;;  %v974_v15 = vshll.u32 %v2317_v6, 16  ;;  %v979_v18 = vshrl.u32 %v2318_v10, 16  ;;  %v2321_v34 = vld [vmem:[#allocation3 + $0xc] sm:$0xf8]   ;;  %2212 = vmatpush3.bf16.msra.mxu1 %v2329_v42 }
 0x1d7   :  { %785 = vrot.lane.b32.xlu1 %v782_v50, %s2385_s17  ;;  %783 = vrot.lane.b32.xlu0 %v770_v58, %s2385_s17  ;;  %v884_v16 = vsel %vm235_vm10, %v875_v3, %v883_v7  ;;  %v858_v17 = vor.u32 %v857_v9, %v854_v8  ;;  %v982_v19 = vshll.u32 %v2318_v10, 16  ;;  %v973_v21 = vrot.slane %v971_v14, 2  ;;  %v2320_v26 = vld [vmem:[#allocation3 + $0x8] ss:$0 sps:$4 sm:$0x77]   ;;  %v2331_v60 = vld [vmem:[%s2821_s4 + $0x10] sm:$0xff]  }
 0x1d8   :  { %v866_v20 = vor.u32 %v865_v13, %v862_v12  ;;  %v976_v22 = vrot.slane %v974_v15, 3  ;;  %v981_v24 = vrot.slane %v979_v18, 2  ;;  %v954_v29 = vshrl.u32 %v2319_v23, 16  ;;  %v2322_v35 = vld [vmem:[#allocation3 + $0x14] ss:$0 sps:$4 sm:$0xff]   ;;  %2213 = vmatprep.subr.bf16.mxu1 %v2330_v48  ;;  %v2332_v8 = vld [vmem:[%s2821_s4 + $0x18] sm:$0xff]  }
 0x1d9   :  { %v984_v25 = vrot.slane %v982_v19, 3  ;;  %v957_v30 = vshll.u32 %v2319_v23, 16  ;;  %v962_v32 = vshrl.u32 %v2320_v26, 16  ;;  %v965_v33 = vshll.u32 %v2320_v26, 16  ;;  %v2323_v47 = vld [vmem:[#allocation3] sm:$0xf8]  }
 0x1da   :  { %v867_v27 = vsel %vm235_vm10, %v858_v17, %v866_v20  ;;  %v977_v28 = vor.u32 %v976_v22, %v973_v21  ;;  %v956_v36 = vrot.slane %v954_v29, 2  ;;  %v1073_v41 = vshrl.u32 %v2321_v34, 16  ;;  %v2324_v51 = vld [vmem:[#allocation3 + $0x8] ss:$0 sps:$4 sm:$0xff]   ;;  %2214 = vmatpush3.bf16.msra.mxu1 %v2330_v48  ;;  %v2325_v6 = vld [vmem:[#allocation3 + $0x10] sm:$0xff]  }
 0x1db   :  { %887 = vrot.lane.b32.xlu1 %v884_v16, %s2386_s18  ;;  %885 = vrot.lane.b32.xlu0 %v867_v27, %s2386_s18  ;;  %v985_v31 = vor.u32 %v984_v25, %v981_v24  ;;  %v959_v37 = vrot.slane %v957_v30, 3  ;;  %v964_v39 = vrot.slane %v962_v32, 2  ;;  %v967_v40 = vrot.slane %v965_v33, 3  ;;  %v2333_v9 = vld [vmem:[%s2821_s4 + $0x20] ss:$0 sps:$4 sm:$0xff]   ;;  %v2380_v32 = vld [vmem:[%s2817_s0 + $0x8] sm:$0xff] }
 0x1dc   :  { %v1076_v44 = vshll.u32 %v2321_v34, 16  ;;  %v1081_v45 = vshrl.u32 %v2322_v35, 16  ;;  %v1084_v46 = vshll.u32 %v2322_v35, 16  ;;  %v1075_v50 = vrot.slane %v1073_v41, 3  ;;  %2215 = vmatprep.subr.bf16.mxu1 %v2331_v60  ;;  %v2326_v10 = vld [vmem:[#allocation3 + $0x4] sm:$0xff]  }
 0x1dd   :  { %v986_v38 = vsel %vm2835_vm12, %v977_v28, %v985_v31  ;;  %v960_v43 = vor.u32 %v959_v37, %v956_v36  ;;  %v968_v49 = vor.u32 %v967_v40, %v964_v39  ;;  %v1056_v55 = vshrl.u32 %v2323_v47, 16  ;;  %v2379_v31 = vld [vmem:[%s2817_s0] sm:$0xff]  ;;  %v2381_v36 = vld [vmem:[%s2817_s0 + $0x10] sm:$0xff]  ;;  %v2382_v37 = vld [vmem:[%s2817_s0 + $0x18] sm:$0xff] }
 0x1de   :  { %v1078_v52 = vrot.slane %v1076_v44, 4  ;;  %v1083_v53 = vrot.slane %v1081_v45, 3  ;;  %v1086_v54 = vrot.slane %v1084_v46, 4  ;;  %v1059_v57 = vshll.u32 %v2323_v47, 16  ;;  %2216 = vmatpush3.bf16.msra.mxu1 %v2331_v60  ;;  %v1880_v34 = vld [vmem:[%s2822_s10] sm:$0x3] }
 0x1df   :  { %989 = vrot.lane.b32.xlu1 %v986_v38, %s2393_s20  ;;  %v969_v56 = vsel %vm2835_vm12, %v960_v43, %v968_v49  ;;  %v1064_v58 = vshrl.u32 %v2324_v51, 16  ;;  %v1067_v59 = vshll.u32 %v2324_v51, 16  ;;  %v1058_v62 = vrot.slane %v1056_v55, 3  ;;  %2217 = vmatprep.subr.bf16.mxu1 %v2332_v8 }
 0x1e0   :  { %987 = vrot.lane.b32.xlu0 %v969_v56, %s2393_s20  ;;  %v1079_v0 = vor.u32 %v1078_v52, %v1075_v50  ;;  %v1087_v61 = vor.u32 %v1086_v54, %v1083_v53  ;;  %v1061_v63 = vrot.slane %v1059_v57, 4  ;;  %v1159_v12 = vsel %vm2833_vm2, %v2333_v9, 0 }
 0x1e1   :  { %v1066_v1 = vrot.slane %v1064_v58, 3  ;;  %v1069_v2 = vrot.slane %v1067_v59, 4  ;;  %vm2841_vm12 = vcmask 458112   ;;  %v56_v33 = vpack.c.bf16 %v2380_v32, %v2379_v31 }
 0x1e2   :  { %v1088_v3 = vsel %vm2834_vm13, %v1079_v0, %v1087_v61  ;;  %v1062_v4 = vor.u32 %v1061_v63, %v1058_v62  ;;  %2218 = vmatpush3.bf16.msra.mxu1 %v2332_v8  ;;  %v57_v38 = vpack.c.bf16 %v2382_v37, %v2381_v36 }
 0x1e3   :  { %1091 = vrot.lane.b32.xlu1 %v1088_v3, %s2394_s25  ;;  %v1070_v5 = vor.u32 %v1069_v2, %v1066_v1  ;;  %2246 = vmatprep.subr.msk.bf16.mxu1 %vm2833_vm2, %v2333_v9  ;;  %vm2838_vm2 = vcmask 326912  }
 0x1e5   :  { %v1071_v7 = vsel %vm2834_vm13, %v1062_v4, %v1070_v5  ;;  %vm993_vm13 = vcmask 392512  }
 0x1e6   :  { %1089 = vrot.lane.b32.xlu0 %v1071_v7, %s2394_s25  ;;  %2220 = vmatpush3.bf16.msra.mxu1 %v1159_v12 }
 0x1e7   :  { %1114 = vrot.lane.b32.xlu1 %v2325_v6, %s2395_s28 }
 0x1ea   :  { %1112 = vrot.lane.b32.xlu0 %v2326_v10, %s2395_s28 }
 0x23d   :  { %v823_v13 = vpop.permute.xlu1 %822  ;;  %v821_v14 = vpop.permute.xlu0 %820 }
 0x241   :  { %v925_v15 = vpop.permute.xlu1 %924  ;;  %v923_v16 = vpop.permute.xlu0 %922 }
 0x245   :  { %v1027_v17 = vpop.permute.xlu1 %1026  ;;  %v1025_v18 = vpop.permute.xlu0 %1024 }
 0x249   :  { %v786_v19 = vpop.permute.xlu1 %785  ;;  %v784_v20 = vpop.permute.xlu0 %783 }
 0x24a   :  { %791 = vst.msk [vmem:[#allocation5 + $0x8] sm:$0xff] %vm2837_vm3, %v786_v19  ;;  %790 = vst.msk [vmem:[#allocation5] sm:$0xff] %vm2837_vm3, %v784_v20  ;;  %vm2839_vm3 = vcmask 589312  }
 0x24b   :  { %828 = vst.msk [vmem:[#allocation5 + $0x8] sm:$0xff] %vm2836_vm5, %v823_v13  ;;  %827 = vst.msk [vmem:[#allocation5] sm:$0xff] %vm2836_vm5, %v821_v14  ;;  %vm2840_vm5 = vcmask 523712  }
 0x24d   :  { %v888_v21 = vpop.permute.xlu1 %887  ;;  %v886_v22 = vpop.permute.xlu0 %885 }
 0x24e   :  { %893 = vst.msk [vmem:[#allocation5 + $0x8] sm:$0xff] %vm891_vm14, %v888_v21  ;;  %892 = vst.msk [vmem:[#allocation5] sm:$0xff] %vm891_vm14, %v886_v22  ;;  %v2116_v21 = vld [vmem:[%s2823_s5] ss:$0 sm:$0xff] }
 0x24f   :  { %930 = vst.msk [vmem:[#allocation5 + $0x8] sm:$0xff] %vm2838_vm2, %v925_v15  ;;  %929 = vst.msk [vmem:[#allocation5] sm:$0xff] %vm2838_vm2, %v923_v16  ;;  %vm2842_vm2 = vcmask 588800  }
 0x251   :  { %v990_v23 = vpop.permute.xlu1 %989 }
 0x252   :  { %995 = vst.msk [vmem:[#allocation5 + $0x8] sm:$0xff] %vm993_vm13, %v990_v23  ;;  %v988_v24 = vpop.permute.xlu0 %987 }
 0x253   :  { %1032 = vst.msk [vmem:[#allocation5 + $0x8] sm:$0xff] %vm2841_vm12, %v1027_v17 }
 0x254   :  { %994 = vst.msk [vmem:[#allocation5] sm:$0xff] %vm993_vm13, %v988_v24 }
 0x255   :  { %1031 = vst.msk [vmem:[#allocation5] sm:$0xff] %vm2841_vm12, %v1025_v18  ;;  %v1092_v25 = vpop.permute.xlu1 %1091  ;;  %vm2847_vm12 = vcmask 31744  }
 0x256   :  { %1097 = vst.msk [vmem:[#allocation5 + $0x8] sm:$0xff] %vm2840_vm5, %v1092_v25 }
 0x258   :  { %v1090_v26 = vpop.permute.xlu0 %1089 }
 0x259   :  { %1096 = vst.msk [vmem:[#allocation5] sm:$0xff] %vm2840_vm5, %v1090_v26  ;;  %v1115_v27 = vpop.permute.xlu1 %1114  ;;  %v2117_v26 = vld [vmem:[%s2824_s6] ss:$0 sm:$0xff] }
 0x25a   :  { %1120 = vst.msk [vmem:[#allocation5 + $0x8] sm:$0xff] %vm2839_vm3, %v1115_v27 }
 0x25c   :  { %v1113_v28 = vpop.permute.xlu0 %1112 }
 0x25d   :  { %1119 = vst.msk [vmem:[#allocation5] sm:$0xff] %vm2839_vm3, %v1113_v28  ;;  %vm2845_vm3 = vcmask 1041408  }
 0x25e   :  { %2248 = vmatprep.subr.msk.bf16.mxu1 %vm2845_vm3, %v1880_v34  ;;  %vm2846_vm5 = vmmov %vm2845_vm3 }
 0x25f   :  { %v1888_v35 = vsel %vm2846_vm5, %v1880_v34, 0 }
 0x261   :  { %v1122_v29 = vld [vmem:[#allocation5 + $0x8] sm:$0xff] }
 0x264   :  { %v1121_v30 = vld [vmem:[#allocation5] sm:$0xff] }
 0x265   :  { %2221 = vmatprep.mubr.msk.bf16.mxu1 %vm2842_vm2, %v1121_v30 }
 0x266   :  { %2222 = vmatmul.mubr.msk.bf16.vlgmr.msra.gmra.mrb[0].mxu1 %vm2842_vm2, %v1122_v29  ;;  %vm2848_vm2 = vmmov %vm2847_vm12 }
 0x267   :  { %2241 = vmatprep.mubr.msk.bf16.mxu1 %vm2847_vm12, %v56_v33  ;;  %2240 = vmatpush3.bf16.msra.mxu1 %v1888_v35 }
 0x26e   :  { %2242 = vmatmul.mubr.msk.bf16.vlgmr.msra.gmra.mrb[4].mxu1 %vm2848_vm2, %v57_v38 }
 0x339   :  { %v2223_v39 = vpop.f32.mrb[0].mxu1 }
 0x33a   :  { %v1195_v40 = vpop.f32.mrb[1].mxu1  ;;  %v1228_v44 = vmul.f32 %v2223_v39, %v2223_v39  ;;  %v1215_v49 = vsel %vm589_vm11, %v2223_v39, 0.0 }
 0x33b   :  { %v1226_v41 = vmul.f32 %v1195_v40, %v1195_v40  ;;  %v2224_v42 = vpop.f32.mrb[2].mxu1  ;;  %v1212_v45 = vsel %vm589_vm11, %v1195_v40, 0.0 }
 0x33c   :  { %v1198_v43 = vpop.f32.mrb[3].mxu1  ;;  %v1229_v51 = vmul.f32 %v2224_v42, %v2224_v42  ;;  %v1233_v55 = vsel %vm589_vm11, %v1228_v44, 0.0  ;;  %v1217_v56 = vsel %vm589_vm11, %v2224_v42, 0.0 }
 0x33d   :  { %v1213_v46 = vsel %vm589_vm11, %v1198_v43, 0.0  ;;  %v1227_v47 = vmul.f32 %v1198_v43, %v1198_v43  ;;  %v1230_v50 = vsel %vm589_vm11, %v1226_v41, 0.0 }
 0x33e   :  { %v1214_v48 = vadd.f32 %v1213_v46, %v1212_v45  ;;  %v1235_v59 = vsel %vm589_vm11, %v1229_v51, 0.0 }
 0x33f   :  { %v1231_v52 = vsel %vm589_vm11, %v1227_v47, 0.0 }
 0x340   :  { %v1216_v53 = vadd.f32 %v1215_v49, %v1214_v48  ;;  %v1232_v54 = vadd.f32 %v1231_v52, %v1230_v50 }
 0x342   :  { %v1218_v57 = vadd.f32 %v1217_v56, %v1216_v53  ;;  %v1234_v58 = vadd.f32 %v1233_v55, %v1232_v54 }
 0x344   :  { %v1219_v60 = vrot.slane %v1218_v57, 4  ;;  %v1236_v0 = vadd.f32 %v1235_v59, %v1234_v58 }
 0x346   :  { %v1220_v61 = vadd.f32 %v1219_v60, %v1218_v57  ;;  %v1237_v62 = vrot.slane %v1236_v0, 4 }
 0x348   :  { %v1221_v63 = vrot.slane %v1220_v61, 2  ;;  %v1238_v1 = vadd.f32 %v1237_v62, %v1236_v0 }
 0x34a   :  { %v1222_v2 = vadd.f32 %v1221_v63, %v1220_v61  ;;  %v1239_v3 = vrot.slane %v1238_v1, 2 }
 0x34c   :  { %v1223_v4 = vrot.slane %v1222_v2, 1  ;;  %v1240_v5 = vadd.f32 %v1239_v3, %v1238_v1 }
 0x34e   :  { %v1224_v6 = vadd.f32 %v1223_v4, %v1222_v2  ;;  %v1241_v7 = vrot.slane %v1240_v5, 1 }
 0x350   :  { %v1225_v8 = vmul.f32 0.03125, %v1224_v6  ;;  %v1242_v9 = vadd.f32 %v1241_v7, %v1240_v5 }
 0x352   :  { %v1243_v10 = vmul.f32 0.03125, %v1242_v9  ;;  %v1244_v12 = vmul.f32 %v1225_v8, %v1225_v8  ;;  %v1247_v13 = vsub.f32 %v1195_v40, %v1225_v8  ;;  %v1248_v14 = vsub.f32 %v1198_v43, %v1225_v8 }
 0x353   :  { %v1249_v15 = vsub.f32 %v2223_v39, %v1225_v8  ;;  %v1250_v16 = vsub.f32 %v2224_v42, %v1225_v8 }
 0x354   :  { %v1245_v17 = vsub.f32 %v1243_v10, %v1244_v12 }
 0x356   :  { %v1246_v18 = vmax.f32 %v1245_v17, 0.0 }
 0x358   :  { %v1251_v19 = vadd.f32 1e-05, %v1246_v18 }
 0x35a   :  { %2373 = vrsqrt.f32 %v1251_v19 }
 0x364   :  { %v2374_v20 = vpop.eup %2373 }
 0x365   :  { %v1253_v22 = vmul.f32 %v2374_v20, %v1247_v13  ;;  %v1254_v23 = vmul.f32 %v2374_v20, %v1248_v14  ;;  %v1255_v24 = vmul.f32 %v2374_v20, %v1249_v15  ;;  %v1256_v25 = vmul.f32 %v2374_v20, %v1250_v16 }
 0x367   :  { %v1263_v27 = vmul.f32 %v2116_v21, %v1253_v22  ;;  %v1264_v28 = vmul.f32 %v2116_v21, %v1254_v23  ;;  %v1265_v29 = vmul.f32 %v2116_v21, %v1255_v24  ;;  %v1266_v30 = vmul.f32 %v2116_v21, %v1256_v25 }
 0x369   :  { %v1273_v31 = vadd.f32 %v2117_v26, %v1263_v27  ;;  %v1274_v32 = vadd.f32 %v2117_v26, %v1264_v28  ;;  %v1275_v33 = vadd.f32 %v2117_v26, %v1265_v29  ;;  %v1276_v34 = vadd.f32 %v2117_v26, %v1266_v30 }
 0x36b   :  { %vm1277_vm12 = vcmp.ge.f32.partialorder %v1273_v31, 0.0  ;;  %vm1278_vm2 = vcmp.ge.f32.partialorder %v1274_v32, 0.0  ;;  %vm1279_vm3 = vcmp.ge.f32.partialorder %v1275_v33, 0.0  ;;  %vm1280_vm5 = vcmp.ge.f32.partialorder %v1276_v34, 0.0 }
 0x36c   :  { %v1281_v35 = vmul.f32 0.1, %v1273_v31  ;;  %v1282_v36 = vmul.f32 0.1, %v1274_v32  ;;  %v1283_v37 = vmul.f32 0.1, %v1275_v33 }
 0x36d   :  { %v1284_v38 = vmul.f32 0.1, %v1276_v34 }
 0x36e   :  { %v1285_v39 = vsel %vm1277_vm12, %v1273_v31, %v1281_v35  ;;  %v1286_v40 = vsel %vm1278_vm2, %v1274_v32, %v1282_v36  ;;  %v1287_v41 = vsel %vm1279_vm3, %v1275_v33, %v1283_v37  ;;  %vm2859_vm2 = vcmask 326912  }
 0x36f   :  { %v1288_v42 = vsel %vm1280_vm5, %v1276_v34, %v1284_v38  ;;  %v2175_v43 = vpack.c.bf16 %v1285_v39, %v1285_v39  ;;  %v2176_v44 = vpack.c.bf16 %v1286_v40, %v1286_v40  ;;  %v2177_v45 = vpack.c.bf16 %v1287_v41, %v1287_v41  ;;  %vm2860_vm3 = vmmov %vm2859_vm2 }
 0x370   :  { %v2178_v46 = vpack.c.bf16 %v1288_v42, %v1288_v42  ;;  %vm2861_vm5 = vcmask 458112  }
 0x371   :  { %v1301_v47 = vrot.slane %v2175_v43, 6  ;;  %v1303_v48 = vrot.slane %v2176_v44, 6  ;;  %v1306_v49 = vrot.slane %v2177_v45, 6 }
 0x372   :  { %v1308_v50 = vrot.slane %v2178_v46, 6 }
 0x373   :  { %v1302_v51 = vrot.slane %v1301_v47, 4  ;;  %v1305_v52 = vrot.slane %v1303_v48, 4  ;;  %v1307_v53 = vrot.slane %v1306_v49, 4  ;;  %1317 = vst.msk [vmem:[#allocation3] sm:$0xc] %vm702_vm15, %v1301_v47 }
 0x374   :  { %1320 = vst.msk [vmem:[#allocation3 + $0xc] sm:$0xc] %vm702_vm15, %v1306_v49  ;;  %v1310_v54 = vrot.slane %v1308_v50, 4 }
 0x375   :  { %v1304_v55 = vsel %vm2491_vm4, %v1302_v51, %v1303_v48  ;;  %v1309_v56 = vsel %vm2491_vm4, %v1307_v53, %v1308_v50  ;;  %1319 = vst.msk [vmem:[#allocation3 + $0x8] sm:$0x3] %vm705_vm1, %v1305_v52  ;;  %v2366_v53 = vld [vmem:[%s2825_s7] sm:$0xff]  }
 0x376   :  { %1318 = vst.msk [vmem:[#allocation3 + $0x4] sm:$0xf] %vm667_vm0, %v1304_v55  ;;  %1321 = vst.msk [vmem:[#allocation3 + $0x10] sm:$0xf] %vm667_vm0, %v1309_v56  ;;  %2225 = vmatprep.subr.bf16.mxu0 %v2366_v53  ;;  %vm2856_vm0 = vcmask 195712  }
 0x377   :  { %1322 = vst.msk [vmem:[#allocation3 + $0x14] sm:$0x3] %vm705_vm1, %v1310_v54  ;;  %2226 = vmatpush3.bf16.msra.mxu0 %v2366_v53  ;;  %vm2849_vm1 = vsmask.f32 5376  ;;  %vm2858_vm12 = vmmov %vm2856_vm0 }
 0x378   :  { %vm2850_vm4 = vmmov %vm2849_vm1 }
 0x37c   :  { %v2337_v57 = vld [vmem:[#allocation3 + $0x8] ss:$0 sps:$4 sm:$0x11]  }
 0x37d   :  { %v2334_v58 = vld [vmem:[#allocation3 + $0xc] sm:$0xfe]   ;;  %v2336_v0 = vld [vmem:[#allocation3] sm:$0xfe]   ;;  %v1427_v61 = vrot.slane %v2337_v57, 1 }
 0x37e   :  { %v2335_v59 = vld [vmem:[#allocation3 + $0x14] ss:$0 sps:$4 sm:$0x11]   ;;  %v1429_v60 = vrot.slane %v2334_v58, 1  ;;  %v2338_v63 = vld [vmem:[#allocation3 + $0xc] sm:$0xfc]  }
 0x37f   :  { %v1430_v62 = vrot.slane %v2335_v59, 1  ;;  %v2346_v1 = vld [vmem:[#allocation3 + $0xc] sm:$0xff]   ;;  %v1426_v2 = vrot.slane %v2336_v0, 1  ;;  %v2339_v11 = vld [vmem:[#allocation3 + $0x14] ss:$0 sps:$4 sm:$0x33]  }
 0x380   :  { %v1529_v4 = vrot.slane %v2338_v63, 2  ;;  %v2340_v5 = vld [vmem:[#allocation3] sm:$0xfc]   ;;  %v1530_v7 = vrot.slane %v2339_v11, 2  ;;  %v2342_v10 = vld [vmem:[#allocation3 + $0xc] sm:$0xf8]  }
 0x381   :  { %v1431_v3 = vsel %vm197_vm7, %v1429_v60, %v1430_v62  ;;  %v1428_v6 = vsel %vm197_vm7, %v1426_v2, %v1427_v61  ;;  %v2341_v8 = vld [vmem:[#allocation3 + $0x8] ss:$0 sps:$4 sm:$0x33]   ;;  %v1526_v9 = vrot.slane %v2340_v5, 2  ;;  %v1387_v12 = vshll.u32 %v2346_v1, 16  ;;  %v2348_v13 = vld [vmem:[#allocation3] sm:$0xff]  }
 0x382   :  { %1434 = vrot.lane.b32.xlu1 %v1431_v3, %s2384_s16  ;;  %1432 = vrot.lane.b32.xlu0 %v1428_v6, %s2384_s16  ;;  %v1527_v14 = vrot.slane %v2341_v8, 2  ;;  %v2343_v15 = vld [vmem:[#allocation3 + $0x14] ss:$0 sps:$4 sm:$0x77]   ;;  %v1531_v16 = vsel %vm301_vm6, %v1529_v4, %v1530_v7  ;;  %v1629_v17 = vrot.slane %v2342_v10, 3  ;;  %v1385_v24 = vshrl.u32 %v2346_v1, 16 }
 0x383   :  { %v2344_v18 = vld [vmem:[#allocation3] sm:$0xf8]   ;;  %v1389_v19 = vrot.slane %v1387_v12, 1  ;;  %v1630_v21 = vrot.slane %v2343_v15, 3  ;;  %v1375_v28 = vshll.u32 %v2348_v13, 16  ;;  %v1373_v33 = vshrl.u32 %v2348_v13, 16 }
 0x384   :  { %v1528_v20 = vsel %vm301_vm6, %v1526_v9, %v1527_v14  ;;  %v2345_v22 = vld [vmem:[#allocation3 + $0x8] ss:$0 sps:$4 sm:$0x77]   ;;  %v1626_v23 = vrot.slane %v2344_v18, 3  ;;  %v2350_v37 = vld [vmem:[#allocation3 + $0xc] sm:$0xfe]  }
 0x385   :  { %v1627_v25 = vrot.slane %v2345_v22, 3  ;;  %v2347_v26 = vld [vmem:[#allocation3 + $0x14] ss:$0 sps:$4 sm:$0x11]   ;;  %v1631_v27 = vsel %vm405_vm8, %v1629_v17, %v1630_v21  ;;  %v1390_v30 = vor.u32 %v1389_v19, %v1385_v24  ;;  %v1377_v34 = vrot.slane %v1375_v28, 1  ;;  %v2364_v40 = vld [vmem:[#allocation3 + $0xc] sm:$0xff]  }
 0x386   :  { %1534 = vrot.lane.b32.xlu1 %v1531_v16, %s2391_s29  ;;  %1532 = vrot.lane.b32.xlu0 %v1528_v20, %s2391_s29  ;;  %v1392_v31 = vshll.u32 %v2347_v26, 16  ;;  %v2349_v32 = vld [vmem:[#allocation3 + $0x8] ss:$0 sps:$4 sm:$0x11]   ;;  %v1480_v43 = vshrl.u32 %v2350_v37, 16  ;;  %v1483_v44 = vshll.u32 %v2350_v37, 16 }
 0x387   :  { %v1628_v29 = vsel %vm405_vm8, %v1626_v23, %v1627_v25  ;;  %v1380_v36 = vshll.u32 %v2349_v32, 16  ;;  %v1378_v38 = vor.u32 %v1377_v34, %v1373_v33  ;;  %v2351_v39 = vld [vmem:[#allocation3 + $0x14] ss:$0 sps:$4 sm:$0x33]   ;;  %v2365_v45 = vld [vmem:[#allocation3] sm:$0xff]   ;;  %1349 = vst.msk [vmem:[#allocation5 + $0x8] sm:$0xff] %vm589_vm11, %v2364_v40 }
 0x388   :  { %v1394_v35 = vrot.slane %v1392_v31, 1  ;;  %v1488_v46 = vshrl.u32 %v2351_v39, 16  ;;  %v1491_v47 = vshll.u32 %v2351_v39, 16  ;;  %v2352_v48 = vld [vmem:[#allocation3] sm:$0xfe]   ;;  %v1482_v50 = vrot.slane %v1480_v43, 1 }
 0x389   :  { %v1382_v42 = vrot.slane %v1380_v36, 1  ;;  %v1485_v51 = vrot.slane %v1483_v44, 2  ;;  %v2353_v52 = vld [vmem:[#allocation3 + $0x8] ss:$0 sps:$4 sm:$0x33]   ;;  %1348 = vst.msk [vmem:[#allocation5] sm:$0xff] %vm589_vm11, %v2365_v45 }
 0x38a   :  { %1634 = vrot.lane.b32.xlu1 %v1631_v27, %s2392_s2  ;;  %1632 = vrot.lane.b32.xlu0 %v1628_v29, %s2392_s2  ;;  %v1395_v41 = vsel %vm141_vm9, %v1390_v30, %v1394_v35  ;;  %v1490_v54 = vrot.slane %v1488_v46, 1  ;;  %v1493_v55 = vrot.slane %v1491_v47, 2  ;;  %v1463_v56 = vshrl.u32 %v2352_v48, 16  ;;  %v2354_v0 = vld [vmem:[#allocation3 + $0xc] sm:$0xfc]   ;;  %v2368_v33 = vld [vmem:[%s2825_s7 + $0x10] sm:$0xff]  }
 0x38b   :  { %v1383_v49 = vsel %vm141_vm9, %v1378_v38, %v1382_v42  ;;  %v1466_v57 = vshll.u32 %v2352_v48, 16  ;;  %v1486_v58 = vor.u32 %v1485_v51, %v1482_v50  ;;  %v1471_v59 = vshrl.u32 %v2353_v52, 16  ;;  %v2355_v1 = vld [vmem:[#allocation3 + $0x14] ss:$0 sps:$4 sm:$0x77]   ;;  %v2369_v42 = vld [vmem:[%s2825_s7 + $0x18] sm:$0xff]  }
 0x38c   :  { %v1474_v60 = vshll.u32 %v2353_v52, 16  ;;  %v1494_v61 = vor.u32 %v1493_v55, %v1490_v54  ;;  %v1465_v62 = vrot.slane %v1463_v56, 1  ;;  %v1580_v3 = vshrl.u32 %v2354_v0, 16  ;;  %v2356_v13 = vld [vmem:[#allocation3] sm:$0xfc]   ;;  %v2367_v17 = vld [vmem:[%s2825_s7 + $0x8] sm:$0xff]  }
 0x38d   :  { %v1468_v63 = vrot.slane %v1466_v57, 2  ;;  %v1473_v2 = vrot.slane %v1471_v59, 1  ;;  %v1583_v4 = vshll.u32 %v2354_v0, 16  ;;  %v1588_v7 = vshrl.u32 %v2355_v1, 16  ;;  %v2358_v25 = vld [vmem:[#allocation3 + $0xc] sm:$0xf8]   ;;  %2227 = vmatprep.subr.bf16.mxu0 %v2367_v17 }
 0x38e   :  { %1398 = vrot.lane.b32.xlu1 %v1395_v41, %s2385_s17  ;;  %1396 = vrot.lane.b32.xlu0 %v1383_v49, %s2385_s17  ;;  %v1476_v11 = vrot.slane %v1474_v60, 2  ;;  %v1495_v5 = vsel %vm235_vm10, %v1486_v58, %v1494_v61  ;;  %v1591_v8 = vshll.u32 %v2355_v1, 16  ;;  %v1582_v10 = vrot.slane %v1580_v3, 2  ;;  %v2357_v16 = vld [vmem:[#allocation3 + $0x8] ss:$0 sps:$4 sm:$0x77]  }
 0x38f   :  { %v1469_v6 = vor.u32 %v1468_v63, %v1465_v62  ;;  %v1585_v12 = vrot.slane %v1583_v4, 3  ;;  %v1590_v14 = vrot.slane %v1588_v7, 2  ;;  %v1563_v20 = vshrl.u32 %v2356_v13, 16  ;;  %v2359_v26 = vld [vmem:[#allocation3 + $0x14] ss:$0 sps:$4 sm:$0xff]   ;;  %2228 = vmatpush3.bf16.msra.mxu0 %v2367_v17  ;;  %v2363_v63 = vld [vmem:[#allocation3 + $0x4] sm:$0xff]  }
 0x390   :  { %v1477_v9 = vor.u32 %v1476_v11, %v1473_v2  ;;  %v1593_v15 = vrot.slane %v1591_v8, 3  ;;  %v1566_v21 = vshll.u32 %v2356_v13, 16  ;;  %v1571_v23 = vshrl.u32 %v2357_v16, 16  ;;  %v2360_v38 = vld [vmem:[#allocation3] sm:$0xf8]   ;;  %2229 = vmatprep.subr.bf16.mxu0 %v2368_v33  ;;  %v2362_v60 = vld [vmem:[#allocation3 + $0x10] sm:$0xff]  }
 0x391   :  { %v1586_v19 = vor.u32 %v1585_v12, %v1582_v10  ;;  %v1574_v24 = vshll.u32 %v2357_v16, 16  ;;  %v1565_v27 = vrot.slane %v1563_v20, 2  ;;  %v1680_v32 = vshrl.u32 %v2358_v25, 16  ;;  %v2361_v41 = vld [vmem:[#allocation3 + $0x8] ss:$0 sps:$4 sm:$0xff]   ;;  %v2733_v8 = vpop.f32.mrb[4].mxu1 }
 0x392   :  { %1498 = vrot.lane.b32.xlu1 %v1495_v5, %s2386_s18  ;;  %v1478_v18 = vsel %vm235_vm10, %v1469_v6, %v1477_v9  ;;  %v1594_v22 = vor.u32 %v1593_v15, %v1590_v14  ;;  %v1568_v28 = vrot.slane %v1566_v21, 3  ;;  %v1573_v30 = vrot.slane %v1571_v23, 2  ;;  %v2370_v61 = vld [vmem:[%s2825_s7 + $0x20] ss:$0 sps:$4 sm:$0xff]   ;;  %v2736_v9 = vpop.f32.mrb[5].mxu1 }
 0x393   :  { %1496 = vrot.lane.b32.xlu0 %v1478_v18, %s2386_s18  ;;  %v1576_v31 = vrot.slane %v1574_v24, 3  ;;  %v1683_v35 = vshll.u32 %v2358_v25, 16  ;;  %v1688_v36 = vshrl.u32 %v2359_v26, 16  ;;  %v1691_v37 = vshll.u32 %v2359_v26, 16  ;;  %2230 = vmatpush3.bf16.msra.mxu0 %v2368_v33  ;;  %v2745_v14 = vpop.f32.mrb[6].mxu1 }
 0x394   :  { %v1595_v29 = vsel %vm2849_vm1, %v1586_v19, %v1594_v22  ;;  %v1569_v34 = vor.u32 %v1568_v28, %v1565_v27  ;;  %v1682_v40 = vrot.slane %v1680_v32, 3  ;;  %v1663_v46 = vshrl.u32 %v2360_v38, 16  ;;  %2231 = vmatprep.subr.bf16.mxu0 %v2369_v42  ;;  %v2749_v16 = vpop.f32.mrb[7].mxu1  ;;  %vm2862_vm1 = vmmov %vm2861_vm5 }
 0x395   :  { %v1577_v39 = vor.u32 %v1576_v31, %v1573_v30  ;;  %v1685_v43 = vrot.slane %v1683_v35, 4  ;;  %v1690_v44 = vrot.slane %v1688_v36, 3  ;;  %v1693_v45 = vrot.slane %v1691_v37, 4 }
 0x396   :  { %1598 = vrot.lane.b32.xlu1 %v1595_v29, %s2393_s20  ;;  %v1666_v48 = vshll.u32 %v2360_v38, 16  ;;  %v1671_v49 = vshrl.u32 %v2361_v41, 16  ;;  %v1674_v50 = vshll.u32 %v2361_v41, 16  ;;  %v1665_v53 = vrot.slane %v1663_v46, 3 }
 0x397   :  { %v1578_v47 = vsel %vm2850_vm4, %v1569_v34, %v1577_v39  ;;  %v1686_v51 = vor.u32 %v1685_v43, %v1682_v40  ;;  %v1694_v52 = vor.u32 %v1693_v45, %v1690_v44  ;;  %vm2851_vm6 = vsmask.f32 4352  ;;  %2232 = vmatpush3.bf16.msra.mxu0 %v2369_v42 }
 0x398   :  { %1596 = vrot.lane.b32.xlu0 %v1578_v47, %s2393_s20  ;;  %v1668_v54 = vrot.slane %v1666_v48, 4  ;;  %v1673_v55 = vrot.slane %v1671_v49, 3  ;;  %v1676_v56 = vrot.slane %v1674_v50, 4  ;;  %vm2852_vm7 = vmmov %vm2851_vm6  ;;  %vm2853_vm8 = vcmask 1043456  }
 0x399   :  { %v1695_v57 = vsel %vm2851_vm6, %v1686_v51, %v1694_v52  ;;  %2247 = vmatprep.subr.msk.bf16.mxu0 %vm2853_vm8, %v2370_v61  ;;  %vm2854_vm9 = vmmov %vm2853_vm8  ;;  %vm2855_vm10 = vcmask 130112   ;;  %v1957_v10 = vmul.f32 %v2733_v8, %v2733_v8  ;;  %v1941_v12 = vsel %vm589_vm11, %v2736_v9, 0.0 }
 0x39a   :  { %1698 = vrot.lane.b32.xlu1 %v1695_v57, %s2394_s25  ;;  %v1669_v58 = vor.u32 %v1668_v54, %v1665_v53  ;;  %v1677_v59 = vor.u32 %v1676_v56, %v1673_v55  ;;  %v1762_v62 = vsel %vm2854_vm9, %v2370_v61, 0  ;;  %vm2857_vm15 = vmmov %vm2855_vm10  ;;  %v1955_v13 = vmul.f32 %v2736_v9, %v2736_v9 }
 0x39b   :  { %2234 = vmatpush3.bf16.msra.mxu0 %v1762_v62  ;;  %v1944_v15 = vsel %vm589_vm11, %v2733_v8, 0.0  ;;  %v1958_v18 = vmul.f32 %v2745_v14, %v2745_v14  ;;  %v1942_v19 = vsel %vm589_vm11, %v2749_v16, 0.0  ;;  %v1956_v20 = vmul.f32 %v2749_v16, %v2749_v16 }
 0x39c   :  { %v1678_v0 = vsel %vm2852_vm7, %v1669_v58, %v1677_v59  ;;  %v1959_v17 = vsel %vm589_vm11, %v1955_v13, 0.0  ;;  %v1943_v22 = vadd.f32 %v1942_v19, %v1941_v12  ;;  %v1962_v23 = vsel %vm589_vm11, %v1957_v10, 0.0 }
 0x39d   :  { %1696 = vrot.lane.b32.xlu0 %v1678_v0, %s2394_s25  ;;  %v1946_v24 = vsel %vm589_vm11, %v2745_v14, 0.0  ;;  %v1960_v25 = vsel %vm589_vm11, %v1956_v20, 0.0  ;;  %v1964_v29 = vsel %vm589_vm11, %v1958_v18, 0.0  ;;  %vm2865_vm6 = vcmask 589312  }
 0x39e   :  { %1720 = vrot.lane.b32.xlu1 %v2362_v60, %s2395_s28  ;;  %v1945_v26 = vadd.f32 %v1944_v15, %v1943_v22  ;;  %v1961_v27 = vadd.f32 %v1960_v25, %v1959_v17  ;;  %vm2867_vm7 = vcmask 588800  }
 0x39f   :  { %vm2868_vm8 = vmmov %vm2867_vm7 }
 0x3a0   :  { %v1947_v30 = vadd.f32 %v1946_v24, %v1945_v26  ;;  %v1963_v31 = vadd.f32 %v1962_v23, %v1961_v27 }
 0x3a1   :  { %1718 = vrot.lane.b32.xlu0 %v2363_v63, %s2395_s28 }
 0x3a2   :  { %v1948_v33 = vrot.slane %v1947_v30, 4  ;;  %v1965_v34 = vadd.f32 %v1964_v29, %v1963_v31 }
 0x3a4   :  { %v1949_v35 = vadd.f32 %v1948_v33, %v1947_v30  ;;  %v1966_v36 = vrot.slane %v1965_v34, 4 }
 0x3a6   :  { %v1950_v38 = vrot.slane %v1949_v35, 2  ;;  %v1967_v39 = vadd.f32 %v1966_v36, %v1965_v34 }
 0x3a8   :  { %v1951_v40 = vadd.f32 %v1950_v38, %v1949_v35  ;;  %v1968_v41 = vrot.slane %v1967_v39, 2 }
 0x3aa   :  { %v1952_v43 = vrot.slane %v1951_v40, 1  ;;  %v1969_v44 = vadd.f32 %v1968_v41, %v1967_v39 }
 0x3ac   :  { %v1953_v46 = vadd.f32 %v1952_v43, %v1951_v40  ;;  %v1970_v47 = vrot.slane %v1969_v44, 1 }
 0x3ae   :  { %v1954_v49 = vmul.f32 0.03125, %v1953_v46  ;;  %v1971_v50 = vadd.f32 %v1970_v47, %v1969_v44 }
 0x3b0   :  { %v1972_v52 = vmul.f32 0.03125, %v1971_v50  ;;  %v1973_v53 = vmul.f32 %v1954_v49, %v1954_v49  ;;  %v1976_v54 = vsub.f32 %v2736_v9, %v1954_v49  ;;  %v1977_v55 = vsub.f32 %v2749_v16, %v1954_v49 }
 0x3b1   :  { %v1978_v56 = vsub.f32 %v2733_v8, %v1954_v49  ;;  %v1979_v57 = vsub.f32 %v2745_v14, %v1954_v49 }
 0x3b2   :  { %v1974_v58 = vsub.f32 %v1972_v52, %v1973_v53 }
 0x3b4   :  { %v1975_v59 = vmax.f32 %v1974_v58, 0.0 }
 0x3b6   :  { %v1980_v60 = vadd.f32 1e-05, %v1975_v59 }
 0x3b8   :  { %2375 = vrsqrt.f32 %v1980_v60  ;;  %v2162_v60 = vld [vmem:[%s2829_s9] ss:$0 sm:$0xff] }
 0x3c2   :  { %v2376_v62 = vpop.eup %2375 }
 0x3c3   :  { %v1982_v63 = vmul.f32 %v2376_v62, %v1976_v54  ;;  %v2161_v54 = vld [vmem:[%s2827_s8] ss:$0 sm:$0xff] }
 0x3f4   :  { %v1435_v1 = vpop.permute.xlu1 %1434  ;;  %v1433_v2 = vpop.permute.xlu0 %1432 }
 0x3f8   :  { %v1535_v11 = vpop.permute.xlu1 %1534  ;;  %v1533_v3 = vpop.permute.xlu0 %1532 }
 0x3fc   :  { %v1635_v4 = vpop.permute.xlu1 %1634  ;;  %v1633_v5 = vpop.permute.xlu0 %1632 }
 0x400   :  { %v1399_v6 = vpop.permute.xlu1 %1398  ;;  %v1397_v7 = vpop.permute.xlu0 %1396 }
 0x401   :  { %1403 = vst.msk [vmem:[#allocation5 + $0x8] sm:$0xff] %vm2855_vm10, %v1399_v6 }
 0x402   :  { %1439 = vst.msk [vmem:[#allocation5 + $0x8] sm:$0xff] %vm2856_vm0, %v1435_v1  ;;  %v1983_v1 = vmul.f32 %v2376_v62, %v1977_v55  ;;  %v2166_v55 = vld [vmem:[%s2828_s12] ss:$0 sm:$0xff] }
 0x403   :  { %1402 = vst.msk [vmem:[#allocation5] sm:$0xff] %vm2857_vm15, %v1397_v7 }
 0x404   :  { %1438 = vst.msk [vmem:[#allocation5] sm:$0xff] %vm2858_vm12, %v1433_v2  ;;  %v1499_v21 = vpop.permute.xlu1 %1498  ;;  %v1984_v2 = vmul.f32 %v2376_v62, %v1978_v56 }
 0x405   :  { %1503 = vst.msk [vmem:[#allocation5 + $0x8] sm:$0xff] %vm891_vm14, %v1499_v21  ;;  %v1497_v28 = vpop.permute.xlu0 %1496 }
 0x406   :  { %1539 = vst.msk [vmem:[#allocation5 + $0x8] sm:$0xff] %vm2859_vm2, %v1535_v11  ;;  %v1985_v11 = vmul.f32 %v2376_v62, %v1979_v57 }
 0x407   :  { %1502 = vst.msk [vmem:[#allocation5] sm:$0xff] %vm891_vm14, %v1497_v28  ;;  %vm2863_vm14 = vcmask 523712  }
 0x408   :  { %1538 = vst.msk [vmem:[#allocation5] sm:$0xff] %vm2860_vm3, %v1533_v3  ;;  %v1599_v32 = vpop.permute.xlu1 %1598  ;;  %vm2864_vm4 = vmmov %vm2863_vm14 }
 0x409   :  { %1603 = vst.msk [vmem:[#allocation5 + $0x8] sm:$0xff] %vm993_vm13, %v1599_v32 }
 0x40a   :  { %1639 = vst.msk [vmem:[#allocation5 + $0x8] sm:$0xff] %vm2861_vm5, %v1635_v4  ;;  %v1597_v37 = vpop.permute.xlu0 %1596 }
 0x40b   :  { %1602 = vst.msk [vmem:[#allocation5] sm:$0xff] %vm993_vm13, %v1597_v37  ;;  %vm2866_vm13 = vmmov %vm2865_vm6 }
 0x40c   :  { %1638 = vst.msk [vmem:[#allocation5] sm:$0xff] %vm2862_vm1, %v1633_v5  ;;  %v1699_v42 = vpop.permute.xlu1 %1698 }
 0x40d   :  { %1703 = vst.msk [vmem:[#allocation5 + $0x8] sm:$0xff] %vm2863_vm14, %v1699_v42 }
 0x40f   :  { %v1697_v45 = vpop.permute.xlu0 %1696 }
 0x410   :  { %1702 = vst.msk [vmem:[#allocation5] sm:$0xff] %vm2864_vm4, %v1697_v45  ;;  %v1721_v48 = vpop.permute.xlu1 %1720 }
 0x411   :  { %1725 = vst.msk [vmem:[#allocation5 + $0x8] sm:$0xff] %vm2865_vm6, %v1721_v48  ;;  %v2165_v48 = vld [vmem:[%s2826_s11] ss:$0 sm:$0xff] }
 0x412   :  { %v1992_v50 = vmul.f32 %v2165_v48, %v1982_v63  ;;  %v1994_v52 = vmul.f32 %v2165_v48, %v1984_v2  ;;  %v1995_v53 = vmul.f32 %v2165_v48, %v1985_v11 }
 0x413   :  { %v1719_v51 = vpop.permute.xlu0 %1718 }
 0x414   :  { %1724 = vst.msk [vmem:[#allocation5] sm:$0xff] %vm2866_vm13, %v1719_v51  ;;  %v1993_v51 = vmul.f32 %v2165_v48, %v1983_v1  ;;  %v2002_v1 = vadd.f32 %v2166_v55, %v1992_v50  ;;  %v2004_v11 = vadd.f32 %v2166_v55, %v1994_v52 }
 0x416   :  { %v2003_v2 = vadd.f32 %v2166_v55, %v1993_v51 }
 0x418   :  { %v1727_v0 = vld [vmem:[#allocation5 + $0x8] sm:$0xff] }
 0x41b   :  { %v1726_v61 = vld [vmem:[#allocation5] sm:$0xff] }
 0x41c   :  { %2235 = vmatprep.mubr.msk.bf16.mxu0 %vm2867_vm7, %v1726_v61 }
 0x41d   :  { %2236 = vmatmul.mubr.msk.bf16.vlgmr.msra.gmra.mrb[4].mxu0 %vm2868_vm8, %v1727_v0 }
 0x4f0   :  { %v2237_v3 = vpop.f32.mrb[4].mxu0 }
 0x4f1   :  { %v1798_v4 = vpop.f32.mrb[5].mxu0  ;;  %v1831_v8 = vmul.f32 %v2237_v3, %v2237_v3  ;;  %v1818_v14 = vsel %vm589_vm11, %v2237_v3, 0.0 }
 0x4f2   :  { %v1829_v5 = vmul.f32 %v1798_v4, %v1798_v4  ;;  %v2238_v6 = vpop.f32.mrb[6].mxu0  ;;  %v1815_v9 = vsel %vm589_vm11, %v1798_v4, 0.0 }
 0x4f3   :  { %v1801_v7 = vpop.f32.mrb[7].mxu0  ;;  %v1832_v16 = vmul.f32 %v2238_v6, %v2238_v6  ;;  %v1836_v20 = vsel %vm589_vm11, %v1831_v8, 0.0  ;;  %v1820_v21 = vsel %vm589_vm11, %v2238_v6, 0.0 }
 0x4f4   :  { %v1816_v10 = vsel %vm589_vm11, %v1801_v7, 0.0  ;;  %v1830_v12 = vmul.f32 %v1801_v7, %v1801_v7  ;;  %v1833_v15 = vsel %vm589_vm11, %v1829_v5, 0.0 }
 0x4f5   :  { %v1817_v13 = vadd.f32 %v1816_v10, %v1815_v9  ;;  %v1838_v24 = vsel %vm589_vm11, %v1832_v16, 0.0 }
 0x4f6   :  { %v1834_v17 = vsel %vm589_vm11, %v1830_v12, 0.0 }
 0x4f7   :  { %v1819_v18 = vadd.f32 %v1818_v14, %v1817_v13  ;;  %v1835_v19 = vadd.f32 %v1834_v17, %v1833_v15 }
 0x4f9   :  { %v1821_v22 = vadd.f32 %v1820_v21, %v1819_v18  ;;  %v1837_v23 = vadd.f32 %v1836_v20, %v1835_v19 }
 0x4fb   :  { %v1822_v25 = vrot.slane %v1821_v22, 4  ;;  %v1839_v26 = vadd.f32 %v1838_v24, %v1837_v23 }
 0x4fd   :  { %v1823_v27 = vadd.f32 %v1822_v25, %v1821_v22  ;;  %v1840_v28 = vrot.slane %v1839_v26, 4 }
 0x4ff   :  { %v1824_v29 = vrot.slane %v1823_v27, 2  ;;  %v1841_v30 = vadd.f32 %v1840_v28, %v1839_v26 }
 0x501   :  { %v1825_v31 = vadd.f32 %v1824_v29, %v1823_v27  ;;  %v1842_v32 = vrot.slane %v1841_v30, 2 }
 0x503   :  { %v1826_v33 = vrot.slane %v1825_v31, 1  ;;  %v1843_v34 = vadd.f32 %v1842_v32, %v1841_v30 }
 0x505   :  { %v1827_v35 = vadd.f32 %v1826_v33, %v1825_v31  ;;  %v1844_v36 = vrot.slane %v1843_v34, 1 }
 0x507   :  { %v1828_v37 = vmul.f32 0.03125, %v1827_v35  ;;  %v1845_v38 = vadd.f32 %v1844_v36, %v1843_v34 }
 0x509   :  { %v1846_v39 = vmul.f32 0.03125, %v1845_v38  ;;  %v1847_v40 = vmul.f32 %v1828_v37, %v1828_v37  ;;  %v1850_v41 = vsub.f32 %v1798_v4, %v1828_v37  ;;  %v1851_v42 = vsub.f32 %v1801_v7, %v1828_v37 }
 0x50a   :  { %v1852_v43 = vsub.f32 %v2237_v3, %v1828_v37  ;;  %v1853_v44 = vsub.f32 %v2238_v6, %v1828_v37  ;;  %v2005_v3 = vadd.f32 %v2166_v55, %v1995_v53 }
 0x50b   :  { %v1848_v45 = vsub.f32 %v1846_v39, %v1847_v40 }
 0x50d   :  { %v1849_v46 = vmax.f32 %v1848_v45, 0.0 }
 0x50f   :  { %v1854_v47 = vadd.f32 1e-05, %v1849_v46 }
 0x511   :  { %2377 = vrsqrt.f32 %v1854_v47 }
 0x51b   :  { %v2378_v49 = vpop.eup %2377 }
 0x51c   :  { %v1856_v56 = vmul.f32 %v2378_v49, %v1850_v41  ;;  %v1857_v57 = vmul.f32 %v2378_v49, %v1851_v42  ;;  %v1858_v58 = vmul.f32 %v2378_v49, %v1852_v43  ;;  %v1859_v59 = vmul.f32 %v2378_v49, %v1853_v44 }
 0x51e   :  { %v1866_v0 = vmul.f32 %v2161_v54, %v1856_v56  ;;  %v1867_v61 = vmul.f32 %v2161_v54, %v1857_v57  ;;  %v1868_v62 = vmul.f32 %v2161_v54, %v1858_v58  ;;  %v1869_v63 = vmul.f32 %v2161_v54, %v1859_v59 }
 0x520   :  { %v1876_v4 = vadd.f32 %v2162_v60, %v1866_v0  ;;  %v1877_v5 = vadd.f32 %v2162_v60, %v1867_v61  ;;  %v1878_v6 = vadd.f32 %v2162_v60, %v1868_v62  ;;  %v1879_v7 = vadd.f32 %v2162_v60, %v1869_v63 }
 0x522   :  { %v2006_v8 = vadd.f32 %v2002_v1, %v1876_v4  ;;  %v2007_v9 = vadd.f32 %v2003_v2, %v1877_v5  ;;  %v2008_v10 = vadd.f32 %v2004_v11, %v1878_v6  ;;  %v2009_v12 = vadd.f32 %v2005_v3, %v1879_v7 }
 0x524   :  { %vm2010_vm9 = vcmp.ge.f32.partialorder %v2006_v8, 0.0  ;;  %vm2011_vm10 = vcmp.ge.f32.partialorder %v2007_v9, 0.0  ;;  %vm2012_vm0 = vcmp.ge.f32.partialorder %v2008_v10, 0.0  ;;  %vm2013_vm15 = vcmp.ge.f32.partialorder %v2009_v12, 0.0 }
 0x525   :  { %v2014_v13 = vmul.f32 0.1, %v2006_v8  ;;  %v2015_v14 = vmul.f32 0.1, %v2007_v9  ;;  %v2016_v15 = vmul.f32 0.1, %v2008_v10 }
 0x526   :  { %v2017_v16 = vmul.f32 0.1, %v2009_v12 }
 0x527   :  { %v2018_v17 = vsel %vm2010_vm9, %v2006_v8, %v2014_v13  ;;  %v2019_v18 = vsel %vm2011_vm10, %v2007_v9, %v2015_v14  ;;  %v2020_v19 = vsel %vm2012_vm0, %v2008_v10, %v2016_v15 }
 0x528   :  { %v2021_v20 = vsel %vm2013_vm15, %v2009_v12, %v2017_v16  ;;  %2022 = vst.msk [vmem:[%s2830_s13] sm:$0xff] %vm589_vm11, %v2018_v17  ;;  %2023 = vst.msk [vmem:[%s2830_s13 + $0x8] sm:$0xff] %vm589_vm11, %v2019_v18 }
 0x529   :  { %2024 = vst.msk [vmem:[%s2830_s13 + $0x10] sm:$0xff] %vm589_vm11, %v2020_v19  ;;  %2025 = vst.msk [vmem:[%s2830_s13 + $0x18] sm:$0xff] %vm589_vm11, %v2021_v20 }

</bundles_post_ra>
